<compile_context>
chip_gen: v7x
topology: tpu7x:2x2x1
jax: 0.10.0
libtpu: 0.0.40
codegen_flags: <defaults>
</compile_context>

<pallas_src>
import jax
import jax.numpy as jnp
from jax.experimental import pallas as pl
from jax.experimental.pallas import tpu as pltpu

_LANE = 128
_SUBLANE = 8


def _round_up(x, m):
    return ((x + m - 1) // m) * m


def _pad2(x, rows, cols):
    r, c = x.shape
    return jnp.pad(x, ((0, rows - r), (0, cols - c)))


# ---------------------------------------------------------------------------
# Fused kernel: encoder linear -> L SAGE layers -> ids gather -> L2 normalize
# ---------------------------------------------------------------------------

def _make_fused_gnn_kernel(num_layers, n_pad, d_pad, bidirectional,
                           skip_connection):

    def kernel(*refs):
        ids_ref, emb_ref, adj_ref, w_enc_ref, b_enc_ref = refs[:5]
        layer_refs = refs[5:5 + 2 * num_layers]
        out_ref = refs[5 + 2 * num_layers]

        # ---- one-time prologue: degree-normalized adjacency (fwd [+ reverse])
        adj = adj_ref[...]                                     # (Np, Np) f32
        nz = (adj != 0.0).astype(jnp.float32)
        # in-degree (forward graph) = nonzeros per row, clamped to >= 1
        inv_deg = 1.0 / jnp.maximum(jnp.sum(nz, axis=1, keepdims=True), 1.0)
        adj_fwd = adj * inv_deg                                # rows pre-scaled
        if bidirectional:
            # in-degree of reversed graph = nonzeros per column of adj
            inv_deg_r = 1.0 / jnp.maximum(
                jnp.sum(nz, axis=0, keepdims=True), 1.0)       # (1, Np)
            adj_rev = (adj * inv_deg_r).T                      # rows of adj^T scaled
            # stack: both aggregations become a single MXU pass with M = 2*Np
            adj_stack = jnp.concatenate([adj_fwd, adj_rev], axis=0)
        else:
            adj_stack = adj_fwd

        # ---- text encoder: Linear(T, D)
        feat = (jnp.dot(emb_ref[...], w_enc_ref[...],
                        preferred_element_type=jnp.float32)
                + b_enc_ref[...])                              # (Np, Dp)

        # ---- SAGE layers; feat stays resident in VMEM/vregs
        for l in range(num_layers):
            w_blk = layer_refs[2 * l][...]                     # (3Dp,2Dp)/(2Dp,Dp)
            b_blk = layer_refs[2 * l + 1][...]                 # (1,2Dp) / (1,Dp)
            neigh = jnp.dot(adj_stack, feat,
                            preferred_element_type=jnp.float32)
            if bidirectional:
                cat = jnp.concatenate(
                    [feat, neigh[:n_pad], neigh[n_pad:]], axis=1)   # (Np, 3Dp)
            else:
                cat = jnp.concatenate([feat, neigh], axis=1)        # (Np, 2Dp)
            y = jnp.maximum(
                jnp.dot(cat, w_blk, preferred_element_type=jnp.float32)
                + b_blk, 0.0)
            if bidirectional:
                # ReLU(fwd) + ReLU(rev): slabs ReLU'd jointly, now summed
                y = y[:, :d_pad] + y[:, d_pad:]
            if skip_connection:
                y = feat + y
            feat = y

        # ---- gather query rows via one-hot matmul (no dynamic sublane index)
        ids = ids_ref[...]                                     # (Qp, 1) int32
        col = jax.lax.broadcasted_iota(jnp.int32, (ids.shape[0], n_pad), 1)
        sel = (col == ids).astype(jnp.float32)                 # (Qp, Np) one-hot
        g = jnp.dot(sel, feat, preferred_element_type=jnp.float32)  # (Qp, Dp)

        # ---- L2 row-normalize (exact sqrt/divide, matches torch.linalg.norm).
        # Padded feature columns are exact zeros so the norm is unchanged.
        sumsq = jnp.sum(g * g, axis=1, keepdims=True)
        out_ref[...] = g / jnp.sqrt(sumsq)

    return kernel


# ---------------------------------------------------------------------------
# Wrapper: single pallas_call, lane-padded operands resident in VMEM
# ---------------------------------------------------------------------------

def gnn_forward(ids_pos, text_emb, adj, w_enc, b_enc, layer_params,
                bidirectional=True, skip_connection=True):
    n = adj.shape[0]
    t = text_emb.shape[1]
    d = w_enc.shape[1]
    q = ids_pos.shape[0]
    num_layers = len(layer_params)

    # Lane/sublane-aligned padded sizes (parameter prep only, not the hot path)
    n_pad = _round_up(n, _LANE)
    t_pad = _round_up(t, _LANE)
    d_pad = _round_up(d, _LANE)
    q_pad = _round_up(q, _SUBLANE)

    adj_p = _pad2(adj.astype(jnp.float32), n_pad, n_pad)
    emb_p = _pad2(text_emb.astype(jnp.float32), n_pad, t_pad)
    w_enc_p = _pad2(w_enc.astype(jnp.float32), t_pad, d_pad)
    b_enc_p = _pad2(b_enc.reshape(1, d).astype(jnp.float32), 1, d_pad)
    ids_p = jnp.zeros((q_pad, 1), jnp.int32).at[:q, 0].set(
        ids_pos.astype(jnp.int32))

    # Assemble per-layer fused block weights (padded to Dp):
    #   [x | neigh | neigh_r] (Np,3Dp) @ [[Ws, Ws_r], [Wn, 0], [0, Wn_r]]
    flat_params = []
    for (ws, wn, b, ws_r, wn_r, b_r) in layer_params:
        ws_p = _pad2(ws.astype(jnp.float32), d_pad, d_pad)
        wn_p = _pad2(wn.astype(jnp.float32), d_pad, d_pad)
        b_p = _pad2(b.reshape(1, d).astype(jnp.float32), 1, d_pad)
        if bidirectional:
            ws_r_p = _pad2(ws_r.astype(jnp.float32), d_pad, d_pad)
            wn_r_p = _pad2(wn_r.astype(jnp.float32), d_pad, d_pad)
            b_r_p = _pad2(b_r.reshape(1, d).astype(jnp.float32), 1, d_pad)
            zero = jnp.zeros_like(ws_p)
            w_blk = jnp.concatenate([
                jnp.concatenate([ws_p, ws_r_p], axis=1),
                jnp.concatenate([wn_p, zero], axis=1),
                jnp.concatenate([zero, wn_r_p], axis=1)], axis=0)  # (3Dp, 2Dp)
            b_blk = jnp.concatenate([b_p, b_r_p], axis=1)          # (1, 2Dp)
        else:
            w_blk = jnp.concatenate([ws_p, wn_p], axis=0)          # (2Dp, Dp)
            b_blk = b_p
        flat_params += [w_blk, b_blk]

    kernel = _make_fused_gnn_kernel(num_layers, n_pad, d_pad,
                                    bidirectional, skip_connection)
    n_in = 5 + 2 * num_layers
    vmem_spec = lambda: pl.BlockSpec(memory_space=pltpu.MemorySpace.VMEM)

    out_p = pl.pallas_call(
        kernel,
        out_shape=jax.ShapeDtypeStruct((q_pad, d_pad), jnp.float32),
        in_specs=[vmem_spec() for _ in range(n_in)],
        out_specs=vmem_spec(),
    )(ids_p, emb_p, adj_p, w_enc_p, b_enc_p, *flat_params)

    return out_p[:q, :d]


# ---------------------------------------------------------------------------
# Pure-JAX reference for correctness checking.
# ---------------------------------------------------------------------------

def _ref_forward(ids_pos, text_emb, adj, w_enc, b_enc, layer_params,
                 bidirectional=True, skip_connection=True):
    deg = jnp.maximum(jnp.sum((adj != 0).astype(jnp.float32), axis=1,
                              keepdims=True), 1.0)
    adj_r = adj.T
    deg_r = jnp.maximum(jnp.sum((adj_r != 0).astype(jnp.float32), axis=1,
                                keepdims=True), 1.0)
    feat = text_emb @ w_enc + b_enc
    for (ws, wn, b, ws_r, wn_r, b_r) in layer_params:
        neigh = (adj @ feat) / deg
        y = jnp.maximum(feat @ ws + neigh @ wn + b, 0.0)
        if bidirectional:
            neigh_r = (adj_r @ feat) / deg_r
            y = y + jnp.maximum(feat @ ws_r + neigh_r @ wn_r + b_r, 0.0)
        feat = (feat + y) if skip_connection else y
    f = feat[ids_pos]
    return f / jnp.linalg.norm(f, axis=1, keepdims=True)


# ---------------------------------------------------------------------------
# Main
# ---------------------------------------------------------------------------

if __name__ == "__main__":
    N = 64          # nodes in the (synthetic) sampled subgraph
    T = 48          # text embedding dim
    D = 32          # hidden_dim
    L = 2           # num_layers
    Q = 8           # number of query ids

    key = jax.random.PRNGKey(0)
    keys = jax.random.split(key, 6 + L)

    # TODO(synk): DGL PinSAGESampler random-walk sampling / compact_graphs have
    # no Pallas equivalent; the sampled subgraph is synthesized as a dense
    # weighted adjacency matrix instead.
    mask = (jax.random.uniform(keys[0], (N, N)) < 0.15).astype(jnp.float32)
    mask = mask * (1.0 - jnp.eye(N, dtype=jnp.float32))
    weights = jax.random.uniform(keys[1], (N, N), minval=0.1, maxval=1.0)
    adj = (mask * weights).astype(jnp.float32)

    text_emb = jax.random.normal(keys[2], (N, T), dtype=jnp.float32)
    ids_pos = jnp.arange(Q, dtype=jnp.int32)   # query nodes' rows in subgraph

    # text encoder (Linear(T, D))
    w_enc = jax.random.normal(keys[3], (T, D), dtype=jnp.float32) / jnp.sqrt(T)
    b_enc = jax.random.normal(keys[4], (D,), dtype=jnp.float32) * 0.01

    # per-layer SAGEConv params (fc_self, fc_neigh + bias), forward & reverse
    layer_params = []
    for l in range(L):
        kws, kwn, kb, kwsr, kwnr, kbr = jax.random.split(keys[5 + l], 6)
        scale = 1.0 / jnp.sqrt(D)
        layer_params.append((
            jax.random.normal(kws, (D, D), dtype=jnp.float32) * scale,
            jax.random.normal(kwn, (D, D), dtype=jnp.float32) * scale,
            jax.random.normal(kb, (D,), dtype=jnp.float32) * 0.01,
            jax.random.normal(kwsr, (D, D), dtype=jnp.float32) * scale,
            jax.random.normal(kwnr, (D, D), dtype=jnp.float32) * scale,
            jax.random.normal(kbr, (D,), dtype=jnp.float32) * 0.01,
        ))

    out = gnn_forward(ids_pos, text_emb, adj, w_enc, b_enc, layer_params,
                      bidirectional=True, skip_connection=True)
    out = jax.block_until_ready(out)

    ref = _ref_forward(ids_pos, text_emb, adj, w_enc, b_enc, layer_params,
                       bidirectional=True, skip_connection=True)
    assert out.shape == (Q, D)
    assert jnp.allclose(out, ref, atol=1e-4, rtol=1e-4), "mismatch vs reference"

    print("KERNEL_OK")
</pallas_src>

<mosaic_0001>
module attributes {stable_mosaic.version = 11 : i64} {
  func.func @kernel(%arg0: memref<8x1xi32, #tpu.memory_space<vmem>>, %arg1: memref<128x128xf32, #tpu.memory_space<vmem>>, %arg2: memref<128x128xf32, #tpu.memory_space<vmem>>, %arg3: memref<128x128xf32, #tpu.memory_space<vmem>>, %arg4: memref<1x128xf32, #tpu.memory_space<vmem>>, %arg5: memref<384x256xf32, #tpu.memory_space<vmem>>, %arg6: memref<1x256xf32, #tpu.memory_space<vmem>>, %arg7: memref<384x256xf32, #tpu.memory_space<vmem>>, %arg8: memref<1x256xf32, #tpu.memory_space<vmem>>, %arg9: memref<8x128xf32, #tpu.memory_space<vmem>>) attributes {dimension_semantics = [], scalar_prefetch = 0 : i64, scratch_operands = 0 : i64, tpu.core_type = #tpu.core_type<tc>} {
    %c0 = arith.constant 0 : index
    %c0_0 = arith.constant 0 : index
    %0 = vector.load %arg2[%c0, %c0_0] : memref<128x128xf32, #tpu.memory_space<vmem>>, vector<128x128xf32>
    %cst = arith.constant 0.000000e+00 : f32
    %1 = vector.broadcast %cst : f32 to vector<128x128xf32>
    %2 = arith.cmpf one, %0, %1 : vector<128x128xf32>
    %3 = arith.extui %2 : vector<128x128xi1> to vector<128x128xi32>
    %4 = arith.sitofp %3 : vector<128x128xi32> to vector<128x128xf32>
    %cst_1 = arith.constant dense<0.000000e+00> : vector<128xf32>
    %5 = vector.multi_reduction <add>, %4, %cst_1 [1] : vector<128x128xf32> to vector<128xf32>
    %6 = vector.shape_cast %5 : vector<128xf32> to vector<128x1xf32>
    %cst_2 = arith.constant 1.000000e+00 : f32
    %7 = vector.broadcast %cst_2 : f32 to vector<128x1xf32>
    %8 = arith.maximumf %6, %7 : vector<128x1xf32>
    %cst_3 = arith.constant 1.000000e+00 : f32
    %9 = vector.broadcast %cst_3 : f32 to vector<128x1xf32>
    %10 = arith.divf %9, %8 : vector<128x1xf32>
    %11 = vector.broadcast %10 : vector<128x1xf32> to vector<128x128xf32>
    %12 = arith.mulf %0, %11 : vector<128x128xf32>
    %cst_4 = arith.constant dense<0.000000e+00> : vector<128xf32>
    %13 = vector.multi_reduction <add>, %4, %cst_4 [0] : vector<128x128xf32> to vector<128xf32>
    %14 = vector.shape_cast %13 : vector<128xf32> to vector<1x128xf32>
    %cst_5 = arith.constant 1.000000e+00 : f32
    %15 = vector.broadcast %cst_5 : f32 to vector<1x128xf32>
    %16 = arith.maximumf %14, %15 : vector<1x128xf32>
    %cst_6 = arith.constant 1.000000e+00 : f32
    %17 = vector.broadcast %cst_6 : f32 to vector<1x128xf32>
    %18 = arith.divf %17, %16 : vector<1x128xf32>
    %19 = vector.broadcast %18 : vector<1x128xf32> to vector<128x128xf32>
    %20 = arith.mulf %0, %19 : vector<128x128xf32>
    %21 = tpu.transpose %20, [1, 0] : vector<128x128xf32> -> vector<128x128xf32>
    %22 = tpu.concatenate %12, %21 in 0 : vector<128x128xf32>, vector<128x128xf32> -> vector<256x128xf32>
    %c0_7 = arith.constant 0 : index
    %c0_8 = arith.constant 0 : index
    %23 = vector.load %arg1[%c0_7, %c0_8] : memref<128x128xf32, #tpu.memory_space<vmem>>, vector<128x128xf32>
    %c0_9 = arith.constant 0 : index
    %c0_10 = arith.constant 0 : index
    %24 = vector.load %arg3[%c0_9, %c0_10] : memref<128x128xf32, #tpu.memory_space<vmem>>, vector<128x128xf32>
    %cst_11 = arith.constant dense<0.000000e+00> : vector<128x128xf32>
    %25 = tpu.matmul %23, %24, %cst_11 {dimension_numbers = #tpu.dot_dimension_numbers<[1], [0], [0], [1], [0, 0, 1, 1], [], []>} : vector<128x128xf32>, vector<128x128xf32>, vector<128x128xf32> -> vector<128x128xf32>
    %c0_12 = arith.constant 0 : index
    %c0_13 = arith.constant 0 : index
    %26 = vector.load %arg4[%c0_12, %c0_13] : memref<1x128xf32, #tpu.memory_space<vmem>>, vector<1x128xf32>
    %27 = vector.broadcast %26 : vector<1x128xf32> to vector<128x128xf32>
    %28 = arith.addf %25, %27 : vector<128x128xf32>
    %c0_14 = arith.constant 0 : index
    %c0_15 = arith.constant 0 : index
    %29 = vector.load %arg5[%c0_14, %c0_15] : memref<384x256xf32, #tpu.memory_space<vmem>>, vector<384x256xf32>
    %c0_16 = arith.constant 0 : index
    %c0_17 = arith.constant 0 : index
    %30 = vector.load %arg6[%c0_16, %c0_17] : memref<1x256xf32, #tpu.memory_space<vmem>>, vector<1x256xf32>
    %cst_18 = arith.constant dense<0.000000e+00> : vector<256x128xf32>
    %31 = tpu.matmul %22, %28, %cst_18 {dimension_numbers = #tpu.dot_dimension_numbers<[1], [0], [0], [1], [0, 0, 1, 1], [], []>} : vector<256x128xf32>, vector<128x128xf32>, vector<256x128xf32> -> vector<256x128xf32>
    %32 = vector.extract_strided_slice %31 {offsets = [0, 0], sizes = [128, 128], strides = [1, 1]} : vector<256x128xf32> to vector<128x128xf32>
    %33 = vector.extract_strided_slice %31 {offsets = [128, 0], sizes = [128, 128], strides = [1, 1]} : vector<256x128xf32> to vector<128x128xf32>
    %34 = tpu.concatenate %28, %32, %33 in 1 : vector<128x128xf32>, vector<128x128xf32>, vector<128x128xf32> -> vector<128x384xf32>
    %cst_19 = arith.constant dense<0.000000e+00> : vector<128x256xf32>
    %35 = tpu.matmul %34, %29, %cst_19 {dimension_numbers = #tpu.dot_dimension_numbers<[1], [0], [0], [1], [0, 0, 1, 1], [], []>} : vector<128x384xf32>, vector<384x256xf32>, vector<128x256xf32> -> vector<128x256xf32>
    %36 = vector.broadcast %30 : vector<1x256xf32> to vector<128x256xf32>
    %37 = arith.addf %35, %36 : vector<128x256xf32>
    %cst_20 = arith.constant 0.000000e+00 : f32
    %38 = vector.broadcast %cst_20 : f32 to vector<128x256xf32>
    %39 = arith.maximumf %37, %38 : vector<128x256xf32>
    %40 = vector.extract_strided_slice %39 {offsets = [0, 0], sizes = [128, 128], strides = [1, 1]} : vector<128x256xf32> to vector<128x128xf32>
    %41 = vector.extract_strided_slice %39 {offsets = [0, 128], sizes = [128, 128], strides = [1, 1]} : vector<128x256xf32> to vector<128x128xf32>
    %42 = arith.addf %40, %41 : vector<128x128xf32>
    %43 = arith.addf %28, %42 : vector<128x128xf32>
    %c0_21 = arith.constant 0 : index
    %c0_22 = arith.constant 0 : index
    %44 = vector.load %arg7[%c0_21, %c0_22] : memref<384x256xf32, #tpu.memory_space<vmem>>, vector<384x256xf32>
    %c0_23 = arith.constant 0 : index
    %c0_24 = arith.constant 0 : index
    %45 = vector.load %arg8[%c0_23, %c0_24] : memref<1x256xf32, #tpu.memory_space<vmem>>, vector<1x256xf32>
    %cst_25 = arith.constant dense<0.000000e+00> : vector<256x128xf32>
    %46 = tpu.matmul %22, %43, %cst_25 {dimension_numbers = #tpu.dot_dimension_numbers<[1], [0], [0], [1], [0, 0, 1, 1], [], []>} : vector<256x128xf32>, vector<128x128xf32>, vector<256x128xf32> -> vector<256x128xf32>
    %47 = vector.extract_strided_slice %46 {offsets = [0, 0], sizes = [128, 128], strides = [1, 1]} : vector<256x128xf32> to vector<128x128xf32>
    %48 = vector.extract_strided_slice %46 {offsets = [128, 0], sizes = [128, 128], strides = [1, 1]} : vector<256x128xf32> to vector<128x128xf32>
    %49 = tpu.concatenate %43, %47, %48 in 1 : vector<128x128xf32>, vector<128x128xf32>, vector<128x128xf32> -> vector<128x384xf32>
    %cst_26 = arith.constant dense<0.000000e+00> : vector<128x256xf32>
    %50 = tpu.matmul %49, %44, %cst_26 {dimension_numbers = #tpu.dot_dimension_numbers<[1], [0], [0], [1], [0, 0, 1, 1], [], []>} : vector<128x384xf32>, vector<384x256xf32>, vector<128x256xf32> -> vector<128x256xf32>
    %51 = vector.broadcast %45 : vector<1x256xf32> to vector<128x256xf32>
    %52 = arith.addf %50, %51 : vector<128x256xf32>
    %cst_27 = arith.constant 0.000000e+00 : f32
    %53 = vector.broadcast %cst_27 : f32 to vector<128x256xf32>
    %54 = arith.maximumf %52, %53 : vector<128x256xf32>
    %55 = vector.extract_strided_slice %54 {offsets = [0, 0], sizes = [128, 128], strides = [1, 1]} : vector<128x256xf32> to vector<128x128xf32>
    %56 = vector.extract_strided_slice %54 {offsets = [0, 128], sizes = [128, 128], strides = [1, 1]} : vector<128x256xf32> to vector<128x128xf32>
    %57 = arith.addf %55, %56 : vector<128x128xf32>
    %58 = arith.addf %43, %57 : vector<128x128xf32>
    %c0_28 = arith.constant 0 : index
    %c0_29 = arith.constant 0 : index
    %59 = vector.load %arg0[%c0_28, %c0_29] : memref<8x1xi32, #tpu.memory_space<vmem>>, vector<8x1xi32>
    %60 = tpu.iota {dimensions = array<i32: 1>} : vector<8x128xi32>
    %61 = vector.broadcast %59 : vector<8x1xi32> to vector<8x128xi32>
    %62 = arith.cmpi eq, %60, %61 : vector<8x128xi32>
    %63 = arith.extui %62 : vector<8x128xi1> to vector<8x128xi32>
    %64 = arith.sitofp %63 : vector<8x128xi32> to vector<8x128xf32>
    %cst_30 = arith.constant dense<0.000000e+00> : vector<8x128xf32>
    %65 = tpu.matmul %64, %58, %cst_30 {dimension_numbers = #tpu.dot_dimension_numbers<[1], [0], [0], [1], [0, 0, 1, 1], [], []>} : vector<8x128xf32>, vector<128x128xf32>, vector<8x128xf32> -> vector<8x128xf32>
    %66 = arith.mulf %65, %65 : vector<8x128xf32>
    %cst_31 = arith.constant dense<0.000000e+00> : vector<8xf32>
    %67 = vector.multi_reduction <add>, %66, %cst_31 [1] : vector<8x128xf32> to vector<8xf32>
    %68 = vector.shape_cast %67 : vector<8xf32> to vector<8x1xf32>
    %69 = math.sqrt %68 : vector<8x1xf32>
    %70 = vector.broadcast %69 : vector<8x1xf32> to vector<8x128xf32>
    %71 = arith.divf %65, %70 : vector<8x128xf32>
    %c0_32 = arith.constant 0 : index
    %c0_33 = arith.constant 0 : index
    %72 = vector.load %arg9[%c0_32, %c0_33] : memref<8x128xf32, #tpu.memory_space<vmem>>, vector<8x128xf32>
    tpu.vector_store %arg9[%c0_32, %c0_33], %71 {strides = array<i32>} : memref<8x128xf32, #tpu.memory_space<vmem>>, vector<8x128xf32>,
    return
  }
}

</mosaic_0001>

<bundles_post_ra>
// kernel: tpu_custom_call.1
= control target key start
LH: loop header
LB: loop body
LE: loop exit
PB: predicated region body
PF: predicated region fallthrough
CT: control target
= control target key end

     0   :  { %14 = vsyncpa [#allocation3], 0  ;;  %s3835_s0 = inlined_call_operand.vmem [shape: s32[8,1], index: 0, kind: input, shape index: {}]   ;;  %s3836_s1 = inlined_call_operand.hbm [shape: f32[128,128], index: 1, kind: input, shape index: {}]   ;;  %s3837_s2 = inlined_call_operand.hbm [shape: f32[128,128], index: 2, kind: input, shape index: {}]   ;;  %s3838_s3 = inlined_call_operand.hbm [shape: f32[128,128], index: 3, kind: input, shape index: {}]   ;;  %s3839_s4 = inlined_call_operand.vmem [shape: f32[1,128], index: 4, kind: input, shape index: {}]   ;;  %s3840_s5 = inlined_call_operand.hbm [shape: f32[384,256], index: 5, kind: input, shape index: {}]   ;;  %s3841_s6 = inlined_call_operand.vmem [shape: f32[1,256], index: 6, kind: input, shape index: {}]   ;;  %s3842_s7 = inlined_call_operand.hbm [shape: f32[384,256], index: 7, kind: input, shape index: {}]   ;;  %s3843_s8 = inlined_call_operand.vmem [shape: f32[1,256], index: 8, kind: input, shape index: {}]   ;;  %s3844_s9 = inlined_call_operand.hbm [shape: f32[8,128], index: 9, kind: output, shape index: {}]  }
   0x1   :  { %15 = vsyncpa [#allocation6], 0 }
   0x2   :  { %16 = vsyncpa [#allocation9], 0 }
   0x3   :  { %17 = vsyncpa [#allocation4], 0  ;;  %s3114_s30 = smov [#allocation5]   ;;  %s3115_s11 = smov [#allocation8]  }
   0x4   :  { %s37_s10 = sshll.u32 %s3114_s30, 4  ;;  %s63_s12 = sshll.u32 %s3115_s11, 4  ;;  %s38_s10 = int_to_ptr.vmem [resolvable:$true] %s37_s10  ;;  %s3179_s12 = int_to_ptr.vmem [resolvable:$true] %s63_s12 }
   0x5   :  { %s2974_s15 = scalar_lea.hbm %s3837_s2, 2048 }
   0x6   :  { %p2975_p0 = scmp.ne.s32.totalorder %s3837_s2, %s2974_s15  ;;  %p2978_p1 = scmp.lt.u32.totalorder %s2974_s15, %s3837_s2 }
   0x8   :  { %p2980_p2 = pnand %p2978_p1, %p2975_p0 }
   0xa   :  { %2983 = shalt.err (!%p2980_p2)
}
   0xb   :  { %s2984_s20 = scalar_lea.vmem %s38_s10, 2048  ;;  %p2989_p4 = scmp.lt.s32.totalorder %s38_s10, %s38_s10 }
   0xc   :  { %p2985_p3 = scmp.ne.s32.totalorder %s38_s10, %s2984_s20  ;;  %p2990_p5 = scmp.lt.s32.totalorder %s2984_s20, %s2984_s20 }
   0xe   :  { %p2991_p6 = por %p2990_p5, %p2989_p4 }
  0x10   :  { %p2992_p7 = pnand %p2991_p6, %p2985_p3 }
  0x12   :  { %2995 = shalt.err (!%p2992_p7)
}
  0x13   :  { %s3116_s21 = smov 128   ;;  %s3117_s22 = smov 8  }
  0x14   :  { %43 = dma.hbm_to_vmem [thread:$0]  %s3837_s2, 2048, %s38_s10, [#allocation6], %s3116_s21, %s3116_s21, %s3117_s22  }
  0x15   :  { %s2996_s27 = scalar_lea.hbm %s3840_s5, 12288 }
  0x16   :  { %p2997_p8 = scmp.ne.s32.totalorder %s3840_s5, %s2996_s27  ;;  %p3000_p9 = scmp.lt.u32.totalorder %s2996_s27, %s3840_s5 }
  0x18   :  { %p3002_p10 = pnand %p3000_p9, %p2997_p8 }
  0x1a   :  { %3005 = shalt.err (!%p3002_p10)
}
  0x1b   :  { %s3006_s13 = scalar_lea.vmem %s3179_s12, 12288  ;;  %p3011_p12 = scmp.lt.s32.totalorder %s3179_s12, %s3179_s12 }
  0x1c   :  { %p3007_p11 = scmp.ne.s32.totalorder %s3179_s12, %s3006_s13  ;;  %p3012_p13 = scmp.lt.s32.totalorder %s3006_s13, %s3006_s13 }
  0x1e   :  { %p3013_p0 = por %p3012_p13, %p3011_p12 }
  0x20   :  { %p3014_p1 = pnand %p3013_p0, %p3007_p11 }
  0x22   :  { %3017 = shalt.err (!%p3014_p1)
}
  0x23   :  { %s3118_s2 = smov 256   ;;  %s3119_s10 = smov 16  }
  0x24   :  { %69 = dma.hbm_to_vmem [thread:$0]  %s3840_s5, 12288, %s3179_s12, [#allocation9], %s3118_s2, %s3118_s2, %s3119_s10  }
  0x25   :  { %s3120_s16 = smov [#allocation2]   ;;  %s3121_s18 = smov [#allocation7]  }
  0x26   :  { %s25_s17 = sshll.u32 %s3120_s16, 4  ;;  %s49_s19 = sshll.u32 %s3121_s18, 4  ;;  %s26_s17 = int_to_ptr.vmem [resolvable:$true] %s25_s17  ;;  %s3216_s19 = int_to_ptr.vmem [resolvable:$true] %s49_s19 }
  0x27   :  { %s3018_s24 = scalar_lea.hbm %s3836_s1, 2048 }
  0x28   :  { %p3019_p2 = scmp.ne.s32.totalorder %s3836_s1, %s3018_s24  ;;  %p3022_p3 = scmp.lt.u32.totalorder %s3018_s24, %s3836_s1 }
  0x2a   :  { %p3024_p4 = pnand %p3022_p3, %p3019_p2 }
  0x2c   :  { %3027 = shalt.err (!%p3024_p4)
}
  0x2d   :  { %s3028_s5 = scalar_lea.vmem %s26_s17, 2048  ;;  %p3033_p6 = scmp.lt.s32.totalorder %s26_s17, %s26_s17 }
  0x2e   :  { %p3029_p5 = scmp.ne.s32.totalorder %s26_s17, %s3028_s5  ;;  %p3034_p7 = scmp.lt.s32.totalorder %s3028_s5, %s3028_s5 }
  0x30   :  { %p3035_p8 = por %p3034_p7, %p3033_p6 }
  0x32   :  { %p3036_p9 = pnand %p3035_p8, %p3029_p5 }
  0x34   :  { %3039 = shalt.err (!%p3036_p9)
}
  0x35   :  { %31 = dma.hbm_to_vmem [thread:$0]  %s3836_s1, 2048, %s26_s17, [#allocation3], %s3116_s21, %s3116_s21, %s3117_s22  }
  0x36   :  { %s3040_s13 = scalar_lea.hbm %s3838_s3, 2048 }
  0x37   :  { %p3041_p10 = scmp.ne.s32.totalorder %s3838_s3, %s3040_s13  ;;  %p3044_p11 = scmp.lt.u32.totalorder %s3040_s13, %s3838_s3 }
  0x39   :  { %p3046_p12 = pnand %p3044_p11, %p3041_p10 }
  0x3b   :  { %3049 = shalt.err (!%p3046_p12)
}
  0x3c   :  { %s3050_s20 = scalar_lea.vmem %s3216_s19, 2048  ;;  %p3055_p0 = scmp.lt.s32.totalorder %s3216_s19, %s3216_s19 }
  0x3d   :  { %p3051_p13 = scmp.ne.s32.totalorder %s3216_s19, %s3050_s20  ;;  %p3056_p1 = scmp.lt.s32.totalorder %s3050_s20, %s3050_s20 }
  0x3f   :  { %p3057_p2 = por %p3056_p1, %p3055_p0 }
  0x41   :  { %p3058_p3 = pnand %p3057_p2, %p3051_p13 }
  0x43   :  { %3061 = shalt.err (!%p3058_p3)
}
  0x44   :  { %55 = dma.hbm_to_vmem [thread:$0]  %s3838_s3, 2048, %s3216_s19, [#allocation6], %s3116_s21, %s3116_s21, %s3117_s22  }
  0x45   :  { %s3122_s23 = smov [#allocation10]   ;;  %s3062_s27 = scalar_lea.hbm %s3842_s7, 12288 }
  0x46   :  { %s77_s24 = sshll.u32 %s3122_s23, 4  ;;  %p3063_p4 = scmp.ne.s32.totalorder %s3842_s7, %s3062_s27  ;;  %s78_s24 = int_to_ptr.vmem [resolvable:$true] %s77_s24 }
  0x47   :  { %p3066_p5 = scmp.lt.u32.totalorder %s3062_s27, %s3842_s7 }
  0x49   :  { %p3068_p6 = pnand %p3066_p5, %p3063_p4 }
  0x4b   :  { %3071 = shalt.err (!%p3068_p6)
}
  0x4c   :  { %s3072_s30 = scalar_lea.vmem %s78_s24, 12288  ;;  %p3077_p8 = scmp.lt.s32.totalorder %s78_s24, %s78_s24 }
  0x4d   :  { %p3073_p7 = scmp.ne.s32.totalorder %s78_s24, %s3072_s30  ;;  %p3078_p9 = scmp.lt.s32.totalorder %s3072_s30, %s3072_s30 }
  0x4f   :  { %p3079_p10 = por %p3078_p9, %p3077_p8 }
  0x51   :  { %p3080_p11 = pnand %p3079_p10, %p3073_p7 }
  0x53   :  { %3083 = shalt.err (!%p3080_p11)
}
  0x54   :  { %83 = dma.hbm_to_vmem [thread:$0]  %s3842_s7, 12288, %s78_s24, [#allocation9], %s3118_s2, %s3118_s2, %s3119_s10  }
  0x55   :  { %3106 = dma.done.wait [#allocation3], 2048  }
  0x56   :  { %3107 = vsyncadd [#allocation3], 4294965248 }
  0x57   :  { %3108 = dma.done.wait [#allocation6], 4096  }
  0x58   :  { %3109 = vsyncadd [#allocation6], 4294963200 }
  0x59   :  { %3110 = dma.done.wait [#allocation9], 24576  }
  0x5a   :  { %3111 = vsyncadd [#allocation9], 4294942720  ;;  %v349_v0 = vld [vmem:[#allocation7] sm:$0xff]  ;;  %v350_v1 = vld [vmem:[#allocation7 + $0x8] sm:$0xff]  ;;  %v3845_v19 = vmov 0.0  }
  0x5b   :  { %v351_v2 = vld [vmem:[#allocation7 + $0x10] sm:$0xff]  ;;  %v2479_v3 = vpack.c.bf16 %v350_v1, %v349_v0  ;;  %v352_v4 = vld [vmem:[#allocation7 + $0x18] sm:$0xff]  ;;  %v353_v6 = vld [vmem:[#allocation7 + $0x20] sm:$0xff] }
  0x5c   :  { %v2483_v5 = vpack.c.bf16 %v352_v4, %v351_v2  ;;  %v354_v7 = vld [vmem:[#allocation7 + $0x28] sm:$0xff]  ;;  %v333_v9 = vld [vmem:[#allocation2] sm:$0xff]  ;;  %v355_v10 = vld [vmem:[#allocation7 + $0x30] sm:$0xff] }
  0x5d   :  { %2480 = vmatprep.subr.bf16.mxu1 %v2479_v3  ;;  %v2487_v8 = vpack.c.bf16 %v354_v7, %v353_v6  ;;  %v356_v11 = vld [vmem:[#allocation7 + $0x38] sm:$0xff]  ;;  %2260 = vmatprep.mubr.f32.mxu1 %v333_v9  ;;  %v357_v13 = vld [vmem:[#allocation7 + $0x40] sm:$0xff]  ;;  %v358_v14 = vld [vmem:[#allocation7 + $0x48] sm:$0xff] }
  0x5e   :  { %2482 = vmatpush3.bf16.msra.mxu1 %v2479_v3  ;;  %v2491_v12 = vpack.c.bf16 %v356_v11, %v355_v10  ;;  %v3268_v15 = vld [vmem:[#allocation5] sm:$0xff]  ;;  %v3271_v16 = vld [vmem:[#allocation5 + $0x8] sm:$0xff]  ;;  %v3273_v17 = vld [vmem:[#allocation5 + $0x10] sm:$0xff]  ;;  %v2495_v22 = vpack.c.bf16 %v358_v14, %v357_v13 }
  0x5f   :  { %2484 = vmatprep.subr.bf16.mxu1 %v2483_v5  ;;  %vm117_vm0 = vcmp.ne.f32.partialorder %v3268_v15, 0.0  ;;  %v3275_v18 = vld [vmem:[#allocation5 + $0x18] sm:$0xff]  ;;  %vm118_vm1 = vcmp.ne.f32.partialorder %v3271_v16, 0.0  ;;  %vm119_vm2 = vcmp.ne.f32.partialorder %v3273_v17, 0.0  ;;  %v3281_v21 = vld [vmem:[#allocation5 + $0x20] sm:$0xff]  ;;  %v3285_v25 = vld [vmem:[#allocation5 + $0x28] sm:$0xff] }
  0x60   :  { %v2064_v20 = vsel %vm117_vm0, 1.0, %v3845_v19  ;;  %vm120_vm3 = vcmp.ne.f32.partialorder %v3275_v18, 0.0  ;;  %v2065_v23 = vsel %vm118_vm1, 1.0, %v3845_v19  ;;  %v2066_v24 = vsel %vm119_vm2, 1.0, %v3845_v19  ;;  %v359_v26 = vld [vmem:[#allocation7 + $0x50] sm:$0xff]  ;;  %v360_v27 = vld [vmem:[#allocation7 + $0x58] sm:$0xff] }
  0x61   :  { %165 = vadd.xlane.f32.xlu0 %v2064_v20  ;;  %v261_v28 = vadd.f32 %v2065_v23, %v2064_v20  ;;  %169 = vadd.xlane.f32.xlu1 %v2066_v24  ;;  %v2067_v29 = vsel %vm120_vm3, 1.0, %v3845_v19  ;;  %vm121_vm4 = vcmp.ne.f32.partialorder %v3281_v21, 0.0  ;;  %vm122_vm5 = vcmp.ne.f32.partialorder %v3285_v25, 0.0  ;;  %v3290_v31 = vld [vmem:[#allocation5 + $0x30] sm:$0xff]  ;;  %v3292_v33 = vld [vmem:[#allocation5 + $0x38] sm:$0xff]  ;;  %v361_v34 = vld [vmem:[#allocation7 + $0x60] sm:$0xff] }
  0x62   :  { %2486 = vmatpush3.bf16.msra.mxu1 %v2483_v5  ;;  %v2499_v32 = vpack.c.bf16 %v360_v27, %v359_v26  ;;  %v362_v35 = vld [vmem:[#allocation7 + $0x68] sm:$0xff]  ;;  %v2068_v37 = vsel %vm121_vm4, 1.0, %v3845_v19  ;;  %v2069_v38 = vsel %vm122_vm5, 1.0, %v3845_v19  ;;  %vm123_vm6 = vcmp.ne.f32.partialorder %v3290_v31, 0.0  ;;  %v3298_v40 = vld [vmem:[#allocation5 + $0x40] sm:$0xff]  ;;  %v363_v43 = vld [vmem:[#allocation7 + $0x70] sm:$0xff] }
  0x63   :  { %2488 = vmatprep.subr.bf16.mxu1 %v2487_v8  ;;  %v262_v30 = vadd.f32 %v2066_v24, %v261_v28  ;;  %vm124_vm7 = vcmp.ne.f32.partialorder %v3292_v33, 0.0  ;;  %v2503_v41 = vpack.c.bf16 %v362_v35, %v361_v34  ;;  %v3300_v42 = vld [vmem:[#allocation5 + $0x48] sm:$0xff]  ;;  %v364_v44 = vld [vmem:[#allocation7 + $0x78] sm:$0xff]  ;;  %v2070_v46 = vsel %vm123_vm6, 1.0, %v3845_v19  ;;  %v3306_v49 = vld [vmem:[#allocation5 + $0x50] sm:$0xff] }
  0x64   :  { %v2071_v47 = vsel %vm124_vm7, 1.0, %v3845_v19  ;;  %vm125_vm8 = vcmp.ne.f32.partialorder %v3298_v40, 0.0  ;;  %vm126_vm9 = vcmp.ne.f32.partialorder %v3300_v42, 0.0  ;;  %v2507_v50 = vpack.c.bf16 %v364_v44, %v363_v43  ;;  %v3308_v51 = vld [vmem:[#allocation5 + $0x58] sm:$0xff]  ;;  %v3314_v56 = vld [vmem:[#allocation5 + $0x60] sm:$0xff]  ;;  %v3316_v57 = vld [vmem:[#allocation5 + $0x68] sm:$0xff] }
  0x65   :  { %167 = vadd.xlane.f32.xlu0 %v2065_v23  ;;  %171 = vadd.xlane.f32.xlu1 %v2067_v29  ;;  %v263_v36 = vadd.f32 %v2067_v29, %v262_v30  ;;  %v2072_v53 = vsel %vm125_vm8, 1.0, %v3845_v19  ;;  %v2073_v54 = vsel %vm126_vm9, 1.0, %v3845_v19  ;;  %vm127_vm10 = vcmp.ne.f32.partialorder %v3306_v49, 0.0  ;;  %v334_v61 = vld [vmem:[#allocation2 + $0x8] sm:$0xff]  ;;  %v3322_v63 = vld [vmem:[#allocation5 + $0x70] sm:$0xff]  ;;  %v3324_v1 = vld [vmem:[#allocation5 + $0x78] sm:$0xff] }
  0x66   :  { %2490 = vmatpush3.bf16.msra.mxu1 %v2487_v8  ;;  %vm128_vm11 = vcmp.ne.f32.partialorder %v3308_v51, 0.0  ;;  %v2074_v59 = vsel %vm127_vm10, 1.0, %v3845_v19  ;;  %vm129_vm12 = vcmp.ne.f32.partialorder %v3314_v56, 0.0  ;;  %vm130_vm13 = vcmp.ne.f32.partialorder %v3316_v57, 0.0  ;;  %v335_v0 = vld [vmem:[#allocation2 + $0x10] sm:$0xff]  ;;  %v336_v5 = vld [vmem:[#allocation2 + $0x18] sm:$0xff] }
  0x67   :  { %2492 = vmatprep.subr.bf16.mxu1 %v2491_v12  ;;  %v264_v39 = vadd.f32 %v2068_v37, %v263_v36  ;;  %v2075_v60 = vsel %vm128_vm11, 1.0, %v3845_v19  ;;  %v2076_v3 = vsel %vm129_vm12, 1.0, %v3845_v19  ;;  %v2077_v4 = vsel %vm130_vm13, 1.0, %v3845_v19  ;;  %v337_v7 = vld [vmem:[#allocation2 + $0x20] sm:$0xff]  ;;  %v338_v11 = vld [vmem:[#allocation2 + $0x28] sm:$0xff]  ;;  %v339_v13 = vld [vmem:[#allocation2 + $0x30] sm:$0xff] }
  0x68   :  { %vm131_vm14 = vcmp.ne.f32.partialorder %v3322_v63, 0.0  ;;  %vm132_vm15 = vcmp.ne.f32.partialorder %v3324_v1, 0.0  ;;  %v340_v20 = vld [vmem:[#allocation2 + $0x38] sm:$0xff]  ;;  %v341_v23 = vld [vmem:[#allocation2 + $0x40] sm:$0xff]  ;;  %v342_v26 = vld [vmem:[#allocation2 + $0x48] sm:$0xff]  ;;  %vm3126_vm0 = vmmov 0  }
  0x69   :  { %173 = vadd.xlane.f32.xlu0 %v2068_v37  ;;  %175 = vadd.xlane.f32.xlu1 %v2069_v38  ;;  %v265_v45 = vadd.f32 %v2069_v38, %v264_v39  ;;  %v2078_v9 = vsel %vm131_vm14, 1.0, %v3845_v19  ;;  %v2079_v10 = vsel %vm132_vm15, 1.0, %v3845_v19  ;;  %v343_v27 = vld [vmem:[#allocation2 + $0x50] sm:$0xff]  ;;  %v344_v29 = vld [vmem:[#allocation2 + $0x58] sm:$0xff]  ;;  %v345_v30 = vld [vmem:[#allocation2 + $0x60] sm:$0xff] }
  0x6a   :  { %2494 = vmatpush3.bf16.msra.mxu1 %v2491_v12  ;;  %v346_v34 = vld [vmem:[#allocation2 + $0x68] sm:$0xff]  ;;  %v347_v35 = vld [vmem:[#allocation2 + $0x70] sm:$0xff]  ;;  %v348_v37 = vld [vmem:[#allocation2 + $0x78] sm:$0xff] }
  0x6b   :  { %2496 = vmatprep.subr.bf16.mxu1 %v2495_v22  ;;  %v266_v48 = vadd.f32 %v2070_v46, %v265_v45  ;;  %v590_v19 = vld [vmem:[#allocation8 + $0x248] sm:$0xff] }
  0x6d   :  { %177 = vadd.xlane.f32.xlu0 %v2070_v46  ;;  %179 = vadd.xlane.f32.xlu1 %v2071_v47  ;;  %v267_v52 = vadd.f32 %v2071_v47, %v266_v48 }
  0x6e   :  { %2498 = vmatpush3.bf16.msra.mxu1 %v2495_v22 }
  0x6f   :  { %2500 = vmatprep.subr.bf16.mxu1 %v2499_v32  ;;  %v268_v55 = vadd.f32 %v2072_v53, %v267_v52 }
  0x71   :  { %181 = vadd.xlane.f32.xlu0 %v2072_v53  ;;  %183 = vadd.xlane.f32.xlu1 %v2073_v54  ;;  %v269_v58 = vadd.f32 %v2073_v54, %v268_v55 }
  0x72   :  { %2502 = vmatpush3.bf16.msra.mxu1 %v2499_v32 }
  0x73   :  { %2504 = vmatprep.subr.bf16.mxu1 %v2503_v41  ;;  %v270_v62 = vadd.f32 %v2074_v59, %v269_v58 }
  0x75   :  { %185 = vadd.xlane.f32.xlu0 %v2074_v59  ;;  %187 = vadd.xlane.f32.xlu1 %v2075_v60  ;;  %v271_v2 = vadd.f32 %v2075_v60, %v270_v62 }
  0x76   :  { %2506 = vmatpush3.bf16.msra.mxu1 %v2503_v41 }
  0x77   :  { %2508 = vmatprep.subr.bf16.mxu1 %v2507_v50  ;;  %v272_v6 = vadd.f32 %v2076_v3, %v271_v2 }
  0x79   :  { %189 = vadd.xlane.f32.xlu0 %v2076_v3  ;;  %191 = vadd.xlane.f32.xlu1 %v2077_v4  ;;  %v273_v8 = vadd.f32 %v2077_v4, %v272_v6 }
  0x7a   :  { %2510 = vmatpush3.bf16.msra.mxu1 %v2507_v50 }
  0x7b   :  { %v274_v12 = vadd.f32 %v2078_v9, %v273_v8 }
  0x7d   :  { %2261 = vmatmul.mubr.f32.vlgmr.msra.gmra.mrb[0].mxu1 %v334_v61  ;;  %193 = vadd.xlane.f32.xlu0 %v2078_v9  ;;  %v275_v14 = vadd.f32 %v2079_v10, %v274_v12 }
  0x7e   :  { %2263 = vmatprep.mubr.f32.mxu1 %v335_v0  ;;  %195 = vadd.xlane.f32.xlu1 %v2079_v10 }
  0x7f   :  { %v276_v22 = vrot.slane %v275_v14, 4 }
  0x81   :  { %2264 = vmatmul.mubr.f32.gmra.mrb[2].mxu1 %v336_v5  ;;  %v277_v24 = vadd.f32 %v276_v22, %v275_v14 }
  0x82   :  { %2266 = vmatprep.mubr.f32.mxu1 %v337_v7 }
  0x83   :  { %v278_v28 = vrot.slane %v277_v24, 2 }
  0x85   :  { %2267 = vmatmul.mubr.f32.gmra.mrb[4].mxu1 %v338_v11  ;;  %v279_v32 = vadd.f32 %v278_v28, %v277_v24  ;;  %v3362_v11 = vld [vmem:[%s3839_s4] ss:$0 sm:$0xff] }
  0x86   :  { %2269 = vmatprep.mubr.f32.mxu1 %v339_v13 }
  0x87   :  { %v280_v36 = vrot.slane %v279_v32, 1 }
  0x89   :  { %2270 = vmatmul.mubr.f32.gmra.mrb[6].mxu1 %v340_v20  ;;  %v281_v38 = vadd.f32 %v280_v36, %v279_v32 }
  0x8a   :  { %2272 = vmatprep.mubr.f32.mxu1 %v341_v23 }
  0x8b   :  { %v282_v39 = vmax.f32 %v281_v38, 1.0 }
  0x8d   :  { %2273 = vmatmul.mubr.f32.gmra.mrb[8].mxu1 %v342_v26  ;;  %2936 = vrcp.f32 %v282_v39 }
  0x8e   :  { %2275 = vmatprep.mubr.f32.mxu1 %v343_v27 }
  0x91   :  { %2276 = vmatmul.mubr.f32.gmra.mrb[10].mxu1 %v344_v29 }
  0x92   :  { %2278 = vmatprep.mubr.f32.mxu1 %v345_v30 }
  0x95   :  { %2279 = vmatmul.mubr.f32.gmra.mrb[12].mxu1 %v346_v34 }
  0x96   :  { %2281 = vmatprep.mubr.f32.mxu1 %v347_v35 }
  0x97   :  { %v2937_v41 = vpop.eup %2936 }
  0x98   :  { %v285_v43 = vmul.f32 %v2937_v41, %v3268_v15  ;;  %v286_v44 = vmul.f32 %v2937_v41, %v3271_v16  ;;  %v287_v45 = vmul.f32 %v2937_v41, %v3273_v17  ;;  %v288_v46 = vmul.f32 %v2937_v41, %v3275_v18 }
  0x99   :  { %2282 = vmatmul.mubr.f32.gmra.mrb[14].mxu1 %v348_v37  ;;  %v289_v47 = vmul.f32 %v2937_v41, %v3281_v21  ;;  %v290_v48 = vmul.f32 %v2937_v41, %v3285_v25  ;;  %v291_v50 = vmul.f32 %v2937_v41, %v3290_v31  ;;  %v292_v52 = vmul.f32 %v2937_v41, %v3292_v33 }
  0x9a   :  { %v293_v53 = vmul.f32 %v2937_v41, %v3298_v40  ;;  %v294_v54 = vmul.f32 %v2937_v41, %v3300_v42  ;;  %v295_v55 = vmul.f32 %v2937_v41, %v3306_v49  ;;  %v296_v58 = vmul.f32 %v2937_v41, %v3308_v51 }
  0x9b   :  { %v297_v59 = vmul.f32 %v2937_v41, %v3314_v56  ;;  %v298_v60 = vmul.f32 %v2937_v41, %v3316_v57  ;;  %v299_v61 = vmul.f32 %v2937_v41, %v3322_v63  ;;  %v300_v62 = vmul.f32 %v2937_v41, %v3324_v1 }
  0xaa   :  { %301 = vxpose.xlu0.b32.start [1/16] %v285_v43, 128 }
  0xae   :  { %302 = vxpose.xlu0.b32.cont [2/16] %v286_v44, 128 }
  0xb2   :  { %303 = vxpose.xlu0.b32.cont [3/16] %v287_v45, 128 }
  0xb6   :  { %304 = vxpose.xlu0.b32.cont [4/16] %v288_v46, 128 }
  0xba   :  { %305 = vxpose.xlu0.b32.cont [5/16] %v289_v47, 128 }
  0xbe   :  { %306 = vxpose.xlu0.b32.cont [6/16] %v290_v48, 128 }
  0xc2   :  { %307 = vxpose.xlu0.b32.cont [7/16] %v291_v50, 128 }
  0xc6   :  { %308 = vxpose.xlu0.b32.cont [8/16] %v292_v52, 128 }
  0xca   :  { %309 = vxpose.xlu0.b32.cont [9/16] %v293_v53, 128 }
  0xce   :  { %310 = vxpose.xlu0.b32.cont [10/16] %v294_v54, 128 }
  0xd2   :  { %311 = vxpose.xlu0.b32.cont [11/16] %v295_v55, 128 }
  0xd6   :  { %312 = vxpose.xlu0.b32.cont [12/16] %v296_v58, 128 }
  0xda   :  { %313 = vxpose.xlu0.b32.cont [13/16] %v297_v59, 128 }
  0xde   :  { %314 = vxpose.xlu0.b32.cont [14/16] %v298_v60, 128 }
  0xe2   :  { %315 = vxpose.xlu0.b32.cont [15/16] %v299_v61, 128 }
  0xe6   :  { %316 = vxpose.xlu0.b32.end [16/16] %v300_v62, 128 }
  0xee   :  { %v166_v0 = vpop.xlane.xlu0 %165  ;;  %v170_v36 = vpop.xlane.xlu1 %169 }
  0xef   :  { %v197_v2 = vmax.f32 %v166_v0, 1.0  ;;  %v199_v55 = vmax.f32 %v170_v36, 1.0 }
  0xf1   :  { %2938 = vrcp.f32 %v197_v2 }
  0xf2   :  { %v168_v5 = vpop.xlane.xlu0 %167  ;;  %v172_v47 = vpop.xlane.xlu1 %171 }
  0xf3   :  { %v198_v52 = vmax.f32 %v168_v5, 1.0  ;;  %v200_v0 = vmax.f32 %v172_v47, 1.0  ;;  %v520_v47 = vld [vmem:[#allocation8 + $0x18] sm:$0xff] }
  0xf5   :  { %2940 = vrcp.f32 %v198_v52 }
  0xf6   :  { %v3349_v6 = vpop.xlane.xlu0 %173  ;;  %v176_v60 = vpop.xlane.xlu1 %175  ;;  %2942 = vrcp.f32 %v199_v55 }
  0xf7   :  { %2944 = vrcp.f32 %v200_v0  ;;  %v519_v0 = vld [vmem:[#allocation8 + $0x10] sm:$0xff] }
  0xfa   :  { %v3351_v7 = vpop.xlane.xlu0 %177 }
  0xfb   :  { %v2939_v3 = vpop.eup %2938 }
  0xfc   :  { %v245_v4 = vmul.f32 %v2939_v3, %v3268_v15  ;;  %v201_v3 = vmax.f32 %v3349_v6, 1.0  ;;  %v203_v6 = vmax.f32 %v3351_v7, 1.0 }
  0xfe   :  { %2316 = vmatprep.mubr.f32.mxu0 %v245_v4  ;;  %2396 = vmatprep.mubr.f32.mxu1 %v245_v4  ;;  %v3353_v8 = vpop.xlane.xlu0 %181  ;;  %2946 = vrcp.f32 %v201_v3 }
  0xff   :  { %v205_v7 = vmax.f32 %v3353_v8, 1.0  ;;  %v2941_v52 = vpop.eup %2940 }
 0x100   :  { %v2943_v55 = vpop.eup %2942 }
 0x102   :  { %v3355_v9 = vpop.xlane.xlu0 %185 }
 0x103   :  { %v207_v8 = vmax.f32 %v3355_v9, 1.0 }
 0x106   :  { %v3357_v10 = vpop.xlane.xlu0 %189 }
 0x10a   :  { %v3367_v14 = vpop.xlane.xlu0 %193 }
 0x12a   :  { %v3377_v27 = vpop.trf.xlu0 }
 0x12e   :  { %v3390_v37 = vpop.trf.xlu0 }
 0x132   :  { %v3405_v53 = vpop.trf.xlu0 }
 0x136   :  { %v3419_v4 = vpop.trf.xlu0 }
 0x150   :  { %v2262_v12 = vpop.f32.mrb[0].mxu1 }
 0x151   :  { %v3365_v15 = vadd.f32 %v2262_v12, %v3362_v11  ;;  %v438_v13 = vpop.f32.mrb[1].mxu1 }
 0x152   :  { %v3370_v20 = vadd.f32 %v3362_v11, %v438_v13  ;;  %v180_v13 = vpop.xlane.xlu1 %179 }
 0x154   :  { %v2265_v22 = vpop.f32.mrb[2].mxu1  ;;  %v2511_v23 = vpack.c.bf16 %v3365_v15, %v3370_v20 }
 0x155   :  { %v3375_v24 = vadd.f32 %v2265_v22, %v3362_v11  ;;  %v448_v26 = vpop.f32.mrb[3].mxu1 }
 0x156   :  { %v3380_v28 = vadd.f32 %v3362_v11, %v448_v26  ;;  %2512 = vmatprep.subr.bf16.mxu0 %v2511_v23  ;;  %v202_v26 = vmax.f32 %v176_v60, 1.0  ;;  %v184_v36 = vpop.xlane.xlu1 %183 }
 0x157   :  { %2514 = vmatpush3.bf16.msra.mxu0 %v2511_v23  ;;  %v206_v3 = vmax.f32 %v184_v36, 1.0  ;;  %v521_v36 = vld [vmem:[#allocation8 + $0x20] sm:$0xff] }
 0x158   :  { %v2268_v29 = vpop.f32.mrb[4].mxu1  ;;  %v2515_v30 = vpack.c.bf16 %v3375_v24, %v3380_v28  ;;  %2948 = vrcp.f32 %v202_v26 }
 0x159   :  { %v3385_v32 = vadd.f32 %v2268_v29, %v3362_v11  ;;  %v458_v34 = vpop.f32.mrb[5].mxu1  ;;  %2950 = vrcp.f32 %v203_v6 }
 0x15a   :  { %v3388_v35 = vadd.f32 %v3362_v11, %v458_v34  ;;  %2516 = vmatprep.subr.bf16.mxu0 %v2515_v30 }
 0x15b   :  { %2518 = vmatpush3.bf16.msra.mxu0 %v2515_v30 }
 0x15c   :  { %v2271_v38 = vpop.f32.mrb[6].mxu1  ;;  %v2519_v39 = vpack.c.bf16 %v3385_v32, %v3388_v35 }
 0x15d   :  { %v3395_v41 = vadd.f32 %v2271_v38, %v3362_v11  ;;  %v468_v43 = vpop.f32.mrb[7].mxu1 }
 0x15e   :  { %v3398_v44 = vadd.f32 %v3362_v11, %v468_v43  ;;  %2520 = vmatprep.subr.bf16.mxu0 %v2519_v39  ;;  %v204_v43 = vmax.f32 %v180_v13, 1.0  ;;  %v2945_v13 = vpop.eup %2944 }
 0x15f   :  { %2522 = vmatpush3.bf16.msra.mxu0 %v2519_v39  ;;  %v3454_v9 = vmul.f32 %v2945_v13, %v3275_v18 }
 0x160   :  { %v2274_v45 = vpop.f32.mrb[8].mxu1  ;;  %v2523_v46 = vpack.c.bf16 %v3395_v41, %v3398_v44  ;;  %2952 = vrcp.f32 %v204_v43 }
 0x161   :  { %v3403_v48 = vadd.f32 %v2274_v45, %v3362_v11  ;;  %v478_v50 = vpop.f32.mrb[9].mxu1  ;;  %v3435_v45 = vpop.trf.xlu0  ;;  %2954 = vrcp.f32 %v205_v7 }
 0x162   :  { %v3408_v54 = vadd.f32 %v3362_v11, %v478_v50  ;;  %2524 = vmatprep.subr.bf16.mxu0 %v2523_v46  ;;  %2956 = vrcp.f32 %v206_v3  ;;  %v530_v3 = vld [vmem:[#allocation8 + $0x68] sm:$0xff] }
 0x163   :  { %2526 = vmatpush3.bf16.msra.mxu0 %v2523_v46  ;;  %v518_v46 = vld [vmem:[#allocation8 + $0x8] sm:$0xff]  ;;  %2958 = vrcp.f32 %v207_v8 }
 0x164   :  { %v2277_v58 = vpop.f32.mrb[10].mxu1  ;;  %v2527_v59 = vpack.c.bf16 %v3403_v48, %v3408_v54  ;;  %v2543_v60 = vpack.c.bf16 %v520_v47, %v518_v46  ;;  %v528_v46 = vld [vmem:[#allocation8 + $0x58] sm:$0xff] }
 0x165   :  { %v3413_v61 = vadd.f32 %v2277_v58, %v3362_v11  ;;  %v488_v62 = vpop.f32.mrb[11].mxu1  ;;  %v3450_v26 = vpop.trf.xlu0 }
 0x166   :  { %v3416_v2 = vadd.f32 %v3362_v11, %v488_v62  ;;  %2528 = vmatprep.subr.bf16.mxu0 %v2527_v59  ;;  %v517_v62 = vld [vmem:[#allocation8] sm:$0xff] }
 0x167   :  { %2530 = vmatpush3.bf16.msra.mxu0 %v2527_v59  ;;  %v188_v59 = vpop.xlane.xlu1 %187  ;;  %v2545_v6 = vpack.c.bf16 %v519_v0, %v517_v62  ;;  %v527_v62 = vld [vmem:[#allocation8 + $0x50] sm:$0xff] }
 0x168   :  { %v2280_v5 = vpop.f32.mrb[12].mxu1  ;;  %v2531_v12 = vpack.c.bf16 %v3413_v61, %v3416_v2  ;;  %v208_v43 = vmax.f32 %v188_v59, 1.0 }
 0x169   :  { %v3424_v22 = vadd.f32 %v2280_v5, %v3362_v11  ;;  %v498_v23 = vpop.f32.mrb[13].mxu1  ;;  %v522_v5 = vld [vmem:[#allocation8 + $0x28] sm:$0xff]  ;;  %v3461_v0 = vpop.trf.xlu0 }
 0x16a   :  { %v3427_v29 = vadd.f32 %v3362_v11, %v498_v23  ;;  %2532 = vmatprep.subr.bf16.mxu0 %v2531_v12  ;;  %v3448_v23 = vmul.f32 %v2943_v55, %v3273_v17  ;;  %v209_v17 = vmax.f32 %v3357_v10, 1.0  ;;  %2960 = vrcp.f32 %v208_v43  ;;  %v532_v10 = vld [vmem:[#allocation8 + $0x78] sm:$0xff]  ;;  %v534_v43 = vld [vmem:[#allocation8 + $0x88] sm:$0xff] }
 0x16b   :  { %2534 = vmatpush3.bf16.msra.mxu0 %v2531_v12  ;;  %v524_v12 = vld [vmem:[#allocation8 + $0x38] sm:$0xff]  ;;  %v192_v47 = vpop.xlane.xlu1 %191 }
 0x16c   :  { %v2283_v30 = vpop.f32.mrb[14].mxu1  ;;  %v2535_v34 = vpack.c.bf16 %v3424_v22, %v3427_v29  ;;  %v210_v18 = vmax.f32 %v192_v47, 1.0  ;;  %2962 = vrcp.f32 %v209_v17 }
 0x16d   :  { %v3433_v38 = vadd.f32 %v2283_v30, %v3362_v11  ;;  %v508_v39 = vpop.f32.mrb[15].mxu1  ;;  %v2947_v30 = vpop.eup %2946 }
 0x16e   :  { %v3438_v50 = vadd.f32 %v3362_v11, %v508_v39  ;;  %2536 = vmatprep.subr.bf16.mxu0 %v2535_v34  ;;  %v3444_v11 = vmul.f32 %v2941_v52, %v3271_v16  ;;  %v523_v39 = vld [vmem:[#allocation8 + $0x30] sm:$0xff]  ;;  %v526_v16 = vld [vmem:[#allocation8 + $0x48] sm:$0xff]  ;;  %v2949_v7 = vpop.eup %2948  ;;  %v3459_v52 = vmul.f32 %v2947_v30, %v3281_v21  ;;  %v211_v21 = vmax.f32 %v3367_v14, 1.0  ;;  %v3480_v17 = vpop.trf.xlu0 }
 0x16f   :  { %2538 = vmatpush3.bf16.msra.mxu0 %v2535_v34  ;;  %v2547_v34 = vpack.c.bf16 %v524_v12, %v522_v5  ;;  %v2549_v55 = vpack.c.bf16 %v523_v39, %v521_v36  ;;  %v2551_v59 = vpack.c.bf16 %v528_v46, %v526_v16  ;;  %v3465_v5 = vmul.f32 %v2949_v7, %v3285_v25  ;;  %v196_v12 = vpop.xlane.xlu1 %195  ;;  %v529_v36 = vld [vmem:[#allocation8 + $0x60] sm:$0xff]  ;;  %v531_v39 = vld [vmem:[#allocation8 + $0x70] sm:$0xff]  ;;  %v536_v16 = vld [vmem:[#allocation8 + $0x98] sm:$0xff] }
 0x170   :  { %v2539_v58 = vpack.c.bf16 %v3433_v38, %v3438_v50  ;;  %2964 = vrcp.f32 %v210_v18  ;;  %v212_v25 = vmax.f32 %v196_v12, 1.0  ;;  %v2557_v47 = vpack.c.bf16 %v531_v39, %v529_v36  ;;  %v537_v12 = vld [vmem:[#allocation8 + $0xa0] sm:$0xff] }
 0x171   :  { %2966 = vrcp.f32 %v211_v21 }
 0x172   :  { %2540 = vmatprep.subr.bf16.mxu0 %v2539_v58  ;;  %2968 = vrcp.f32 %v212_v25 }
 0x173   :  { %2542 = vmatpush3.bf16.msra.mxu0 %v2539_v58  ;;  %v2951_v58 = vpop.eup %2950 }
 0x174   :  { %2544 = vmatprep.subr.bf16.mxu0 %v2543_v60  ;;  %v525_v60 = vld [vmem:[#allocation8 + $0x40] sm:$0xff]  ;;  %v2953_v8 = vpop.eup %2952  ;;  %v3470_v13 = vmul.f32 %v2951_v58, %v3290_v31 }
 0x175   :  { %v2955_v30 = vpop.eup %2954  ;;  %v3474_v14 = vmul.f32 %v2953_v8, %v3292_v33  ;;  %v533_v58 = vld [vmem:[#allocation8 + $0x80] sm:$0xff]  ;;  %v540_v33 = vld [vmem:[#allocation8 + $0xb8] sm:$0xff]  ;;  %v539_v8 = vld [vmem:[#allocation8 + $0xb0] sm:$0xff] }
 0x176   :  { %2317 = vmatmul.mubr.f32.vlgmr.msra.gmra.mrb[0].mxu0 %v3444_v11  ;;  %v2957_v46 = vpop.eup %2956  ;;  %v3478_v31 = vmul.f32 %v2955_v30, %v3298_v40  ;;  %v542_v30 = vld [vmem:[#allocation8 + $0xc8] sm:$0xff]  ;;  %v2565_v39 = vpack.c.bf16 %v539_v8, %v537_v12  ;;  %v549_v12 = vld [vmem:[#allocation8 + $0x100] sm:$0xff]  ;;  %v551_v8 = vld [vmem:[#allocation8 + $0x110] sm:$0xff] }
 0x177   :  { %2319 = vmatprep.mubr.f32.mxu0 %v3448_v23  ;;  %2546 = vmatpush1.bf16.msra.mxu0 %v2545_v6  ;;  %v2553_v6 = vpack.c.bf16 %v527_v62, %v525_v60  ;;  %v2959_v7 = vpop.eup %2958  ;;  %v538_v60 = vld [vmem:[#allocation8 + $0xa8] sm:$0xff]  ;;  %v3484_v62 = vmul.f32 %v2957_v46, %v3300_v42  ;;  %v543_v46 = vld [vmem:[#allocation8 + $0xd0] sm:$0xff] }
 0x178   :  { %2548 = vmatprep.subr.bf16.mxu0 %v2547_v34  ;;  %v2555_v34 = vpack.c.bf16 %v532_v10, %v530_v3  ;;  %v2961_v18 = vpop.eup %2960  ;;  %v3488_v40 = vmul.f32 %v2959_v7, %v3306_v49  ;;  %v2563_v21 = vpack.c.bf16 %v540_v33, %v538_v60  ;;  %v548_v7 = vld [vmem:[#allocation8 + $0xf8] sm:$0xff]  ;;  %v545_v33 = vld [vmem:[#allocation8 + $0xe0] sm:$0xff] }
 0x179   :  { %v2963_v10 = vpop.eup %2962  ;;  %v3494_v42 = vmul.f32 %v2961_v18, %v3308_v51  ;;  %v547_v18 = vld [vmem:[#allocation8 + $0xf0] sm:$0xff] }
 0x17a   :  { %2320 = vmatmul.mubr.f32.gmra.mrb[2].mxu0 %v3454_v9  ;;  %v2965_v36 = vpop.eup %2964  ;;  %v3498_v49 = vmul.f32 %v2963_v10, %v3314_v56  ;;  %v552_v10 = vld [vmem:[#allocation8 + $0x118] sm:$0xff] }
 0x17b   :  { %2322 = vmatprep.mubr.f32.mxu0 %v3459_v52  ;;  %2550 = vmatpush1.bf16.msra.mxu0 %v2549_v55  ;;  %v2559_v55 = vpack.c.bf16 %v536_v16, %v534_v43  ;;  %v2967_v25 = vpop.eup %2966  ;;  %v541_v16 = vld [vmem:[#allocation8 + $0xc0] sm:$0xff]  ;;  %v3502_v51 = vmul.f32 %v2965_v36, %v3316_v57  ;;  %v556_v36 = vld [vmem:[#allocation8 + $0x138] sm:$0xff] }
 0x17c   :  { %2552 = vmatprep.subr.bf16.mxu0 %v2551_v59  ;;  %v535_v59 = vld [vmem:[#allocation8 + $0x90] sm:$0xff]  ;;  %v3506_v56 = vmul.f32 %v2967_v25, %v3322_v63  ;;  %v2573_v63 = vpack.c.bf16 %v547_v18, %v545_v33  ;;  %v553_v25 = vld [vmem:[#allocation8 + $0x120] sm:$0xff]  ;;  %v562_v33 = vld [vmem:[#allocation8 + $0x168] sm:$0xff] }
 0x17d   :  { %v2561_v3 = vpack.c.bf16 %v535_v59, %v533_v58  ;;  %v2569_v59 = vpack.c.bf16 %v543_v46, %v541_v16  ;;  %v558_v16 = vld [vmem:[#allocation8 + $0x148] sm:$0xff]  ;;  %v560_v46 = vld [vmem:[#allocation8 + $0x158] sm:$0xff] }
 0x17e   :  { %2323 = vmatmul.mubr.f32.gmra.mrb[4].mxu0 %v3465_v5  ;;  %v564_v18 = vld [vmem:[#allocation8 + $0x178] sm:$0xff] }
 0x17f   :  { %2325 = vmatprep.mubr.f32.mxu0 %v3470_v13  ;;  %2554 = vmatpush1.bf16.msra.mxu0 %v2553_v6  ;;  %v3490_v6 = vpop.trf.xlu0 }
 0x180   :  { %2556 = vmatprep.subr.bf16.mxu0 %v2555_v34  ;;  %v544_v34 = vld [vmem:[#allocation8 + $0xd8] sm:$0xff] }
 0x181   :  { %v2567_v43 = vpack.c.bf16 %v544_v34, %v542_v30  ;;  %v554_v34 = vld [vmem:[#allocation8 + $0x128] sm:$0xff] }
 0x182   :  { %2326 = vmatmul.mubr.f32.gmra.mrb[6].mxu0 %v3474_v14 }
 0x183   :  { %2328 = vmatprep.mubr.f32.mxu0 %v3478_v31  ;;  %2558 = vmatpush1.bf16.msra.mxu0 %v2557_v47  ;;  %v546_v47 = vld [vmem:[#allocation8 + $0xe8] sm:$0xff]  ;;  %v3508_v58 = vpop.trf.xlu0 }
 0x184   :  { %2560 = vmatprep.subr.bf16.mxu0 %v2559_v55  ;;  %v2969_v55 = vpop.eup %2968  ;;  %3855 = vst [vmem:[#allocation16_spill] sm:$0xff] %v3508_v58  ;;  %v2571_v60 = vpack.c.bf16 %v548_v7, %v546_v47 }
 0x185   :  { %v3512_v57 = vmul.f32 %v2969_v55, %v3324_v1  ;;  %v2579_v1 = vpack.c.bf16 %v556_v36, %v554_v34  ;;  %v2583_v55 = vpack.c.bf16 %v560_v46, %v558_v16  ;;  %v568_v34 = vld [vmem:[#allocation8 + $0x198] sm:$0xff] }
 0x186   :  { %2329 = vmatmul.mubr.f32.gmra.mrb[8].mxu0 %v3484_v62  ;;  %v572_v16 = vld [vmem:[#allocation8 + $0x1b8] sm:$0xff] }
 0x187   :  { %2331 = vmatprep.mubr.f32.mxu0 %v3488_v40  ;;  %2562 = vmatpush1.bf16.msra.mxu0 %v2561_v3  ;;  %v550_v3 = vld [vmem:[#allocation8 + $0x108] sm:$0xff]  ;;  %v3515_v30 = vpop.trf.xlu0 }
 0x188   :  { %2564 = vmatprep.subr.bf16.mxu0 %v2563_v21  ;;  %v2575_v21 = vpack.c.bf16 %v552_v10, %v550_v3  ;;  %3856 = vst [vmem:[#allocation17_spill] sm:$0xff] %v3515_v30  ;;  %v2587_v10 = vpack.c.bf16 %v564_v18, %v562_v33  ;;  %v574_v33 = vld [vmem:[#allocation8 + $0x1c8] sm:$0xff]  ;;  %v576_v18 = vld [vmem:[#allocation8 + $0x1d8] sm:$0xff] }
 0x18a   :  { %2332 = vmatmul.mubr.f32.gmra.mrb[10].mxu0 %v3494_v42 }
 0x18b   :  { %2334 = vmatprep.mubr.f32.mxu0 %v3498_v49  ;;  %2566 = vmatpush1.bf16.msra.mxu0 %v2565_v39  ;;  %v2577_v39 = vpack.c.bf16 %v551_v8, %v549_v12  ;;  %v3521_v47 = vpop.trf.xlu0  ;;  %v566_v8 = vld [vmem:[#allocation8 + $0x188] sm:$0xff] }
 0x18c   :  { %2568 = vmatprep.subr.bf16.mxu0 %v2567_v43  ;;  %v555_v43 = vld [vmem:[#allocation8 + $0x130] sm:$0xff]  ;;  %3857 = vst [vmem:[#allocation18_spill] sm:$0xff] %v3521_v47 }
 0x18d   :  { %v2581_v7 = vpack.c.bf16 %v555_v43, %v553_v25  ;;  %v567_v25 = vld [vmem:[#allocation8 + $0x190] sm:$0xff]  ;;  %v570_v43 = vld [vmem:[#allocation8 + $0x1a8] sm:$0xff] }
 0x18e   :  { %2335 = vmatmul.mubr.f32.gmra.mrb[12].mxu0 %v3502_v51 }
 0x18f   :  { %2337 = vmatprep.mubr.f32.mxu0 %v3506_v56  ;;  %2570 = vmatpush1.bf16.msra.mxu0 %v2569_v59  ;;  %v557_v59 = vld [vmem:[#allocation8 + $0x140] sm:$0xff]  ;;  %v3525_v12 = vpop.trf.xlu0 }
 0x190   :  { %2572 = vmatprep.subr.bf16.mxu0 %v2571_v60  ;;  %v559_v60 = vld [vmem:[#allocation8 + $0x150] sm:$0xff]  ;;  %3858 = vst [vmem:[#allocation19_spill] sm:$0xff] %v3525_v12 }
 0x191   :  { %v2585_v3 = vpack.c.bf16 %v559_v60, %v557_v59  ;;  %v569_v59 = vld [vmem:[#allocation8 + $0x1a0] sm:$0xff]  ;;  %v571_v60 = vld [vmem:[#allocation8 + $0x1b0] sm:$0xff] }
 0x192   :  { %2338 = vmatmul.mubr.f32.gmra.mrb[14].mxu0 %v3512_v57 }
 0x193   :  { %2340 = vmatprep.mubr.f32.mxu0 %v3377_v27  ;;  %2574 = vmatpush1.bf16.msra.mxu0 %v2573_v63  ;;  %v561_v63 = vld [vmem:[#allocation8 + $0x160] sm:$0xff]  ;;  %v3531_v46 = vpop.trf.xlu0 }
 0x194   :  { %2576 = vmatprep.subr.bf16.mxu0 %v2575_v21  ;;  %v563_v21 = vld [vmem:[#allocation8 + $0x170] sm:$0xff]  ;;  %3859 = vst [vmem:[#allocation20_spill] sm:$0xff] %v3531_v46 }
 0x195   :  { %v2589_v36 = vpack.c.bf16 %v563_v21, %v561_v63  ;;  %v573_v63 = vld [vmem:[#allocation8 + $0x1c0] sm:$0xff]  ;;  %v575_v21 = vld [vmem:[#allocation8 + $0x1d0] sm:$0xff] }
 0x196   :  { %2341 = vmatmul.mubr.f32.gmra.mrb[16].mxu0 %v3390_v37 }
 0x197   :  { %2343 = vmatprep.mubr.f32.mxu0 %v3405_v53  ;;  %2578 = vmatpush1.bf16.msra.mxu0 %v2577_v39  ;;  %v2591_v39 = vpack.c.bf16 %v568_v34, %v566_v8  ;;  %v3535_v8 = vpop.trf.xlu0  ;;  %v578_v34 = vld [vmem:[#allocation8 + $0x1e8] sm:$0xff] }
 0x198   :  { %2580 = vmatprep.subr.bf16.mxu0 %v2579_v1  ;;  %v565_v1 = vld [vmem:[#allocation8 + $0x180] sm:$0xff]  ;;  %3860 = vst [vmem:[#allocation21_spill] sm:$0xff] %v3535_v8 }
 0x19a   :  { %2344 = vmatmul.mubr.f32.gmra.mrb[18].mxu0 %v3419_v4 }
 0x19b   :  { %2346 = vmatprep.mubr.f32.mxu0 %v3435_v45  ;;  %2582 = vmatpush1.bf16.msra.mxu0 %v2581_v7  ;;  %v2593_v7 = vpack.c.bf16 %v567_v25, %v565_v1  ;;  %v3541_v25 = vpop.trf.xlu0 }
 0x19c   :  { %2584 = vmatprep.subr.bf16.mxu0 %v2583_v55  ;;  %v2595_v55 = vpack.c.bf16 %v572_v16, %v570_v43  ;;  %3861 = vst [vmem:[#allocation22_spill] sm:$0xff] %v3541_v25  ;;  %v577_v43 = vld [vmem:[#allocation8 + $0x1e0] sm:$0xff]  ;;  %v579_v16 = vld [vmem:[#allocation8 + $0x1f0] sm:$0xff] }
 0x19e   :  { %2347 = vmatmul.mubr.f32.gmra.mrb[20].mxu0 %v3450_v26 }
 0x19f   :  { %2349 = vmatprep.mubr.f32.mxu0 %v3461_v0  ;;  %2586 = vmatpush1.bf16.msra.mxu0 %v2585_v3  ;;  %v2597_v3 = vpack.c.bf16 %v571_v60, %v569_v59  ;;  %v584_v59 = vld [vmem:[#allocation8 + $0x218] sm:$0xff] }
 0x1a0   :  { %2588 = vmatprep.subr.bf16.mxu0 %v2587_v10  ;;  %v2599_v10 = vpack.c.bf16 %v576_v18, %v574_v33  ;;  %v581_v33 = vld [vmem:[#allocation8 + $0x200] sm:$0xff]  ;;  %v583_v18 = vld [vmem:[#allocation8 + $0x210] sm:$0xff] }
 0x1a2   :  { %2350 = vmatmul.mubr.f32.gmra.mrb[22].mxu0 %v3480_v17 }
 0x1a3   :  { %2352 = vmatprep.mubr.f32.mxu0 %v3490_v6  ;;  %2590 = vmatpush1.bf16.msra.mxu0 %v2589_v36  ;;  %v580_v36 = vld [vmem:[#allocation8 + $0x1f8] sm:$0xff] }
 0x1a4   :  { %2592 = vmatprep.subr.bf16.mxu0 %v2591_v39  ;;  %v2601_v39 = vpack.c.bf16 %v575_v21, %v573_v63  ;;  %v2603_v1 = vpack.c.bf16 %v580_v36, %v578_v34  ;;  %v2609_v21 = vpack.c.bf16 %v583_v18, %v581_v33  ;;  %v596_v33 = vld [vmem:[#allocation8 + $0x278] sm:$0xff] }
 0x1a6   :  { %2353 = vmatmul.mubr.f32.gmra.mrb[24].mxu0 %v3508_v58  ;;  %v611_v58 = vld [vmem:[#allocation8 + $0x2f0] sm:$0xff] }
 0x1a7   :  { %2355 = vmatprep.mubr.f32.mxu0 %v3515_v30  ;;  %2594 = vmatpush1.bf16.msra.mxu0 %v2593_v7  ;;  %v2605_v7 = vpack.c.bf16 %v579_v16, %v577_v43  ;;  %v607_v30 = vld [vmem:[#allocation8 + $0x2d0] sm:$0xff] }
 0x1a8   :  { %2596 = vmatprep.subr.bf16.mxu0 %v2595_v55  ;;  %v582_v55 = vld [vmem:[#allocation8 + $0x208] sm:$0xff] }
 0x1a9   :  { %v2607_v60 = vpack.c.bf16 %v584_v59, %v582_v55  ;;  %v589_v59 = vld [vmem:[#allocation8 + $0x240] sm:$0xff] }
 0x1aa   :  { %2356 = vmatmul.mubr.f32.gmra.mrb[26].mxu0 %v3521_v47  ;;  %v603_v47 = vld [vmem:[#allocation8 + $0x2b0] sm:$0xff] }
 0x1ab   :  { %2358 = vmatprep.mubr.f32.mxu0 %v3525_v12  ;;  %2598 = vmatpush1.bf16.msra.mxu0 %v2597_v3  ;;  %v586_v3 = vld [vmem:[#allocation8 + $0x228] sm:$0xff]  ;;  %v599_v12 = vld [vmem:[#allocation8 + $0x290] sm:$0xff] }
 0x1ac   :  { %2600 = vmatprep.subr.bf16.mxu0 %v2599_v10  ;;  %v588_v10 = vld [vmem:[#allocation8 + $0x238] sm:$0xff] }
 0x1ad   :  { %v2611_v36 = vpack.c.bf16 %v588_v10, %v586_v3 }
 0x1ae   :  { %2359 = vmatmul.mubr.f32.gmra.mrb[28].mxu0 %v3531_v46  ;;  %v595_v46 = vld [vmem:[#allocation8 + $0x270] sm:$0xff] }
 0x1af   :  { %2361 = vmatprep.mubr.f32.mxu0 %v3535_v8  ;;  %2602 = vmatpush1.bf16.msra.mxu0 %v2601_v39  ;;  %v585_v39 = vld [vmem:[#allocation8 + $0x220] sm:$0xff]  ;;  %v594_v8 = vld [vmem:[#allocation8 + $0x268] sm:$0xff] }
 0x1b0   :  { %2604 = vmatprep.subr.bf16.mxu0 %v2603_v1  ;;  %v587_v1 = vld [vmem:[#allocation8 + $0x230] sm:$0xff] }
 0x1b1   :  { %v2613_v16 = vpack.c.bf16 %v587_v1, %v585_v39  ;;  %v600_v39 = vld [vmem:[#allocation8 + $0x298] sm:$0xff] }
 0x1b2   :  { %2362 = vmatmul.mubr.f32.gmra.mrb[30].mxu0 %v3541_v25  ;;  %v592_v25 = vld [vmem:[#allocation8 + $0x258] sm:$0xff] }
 0x1b3   :  { %2606 = vmatpush1.bf16.msra.mxu0 %v2605_v7  ;;  %v2615_v55 = vpack.c.bf16 %v592_v25, %v590_v19 }
 0x1b4   :  { %2608 = vmatprep.subr.bf16.mxu0 %v2607_v60  ;;  %v591_v60 = vld [vmem:[#allocation8 + $0x250] sm:$0xff] }
 0x1b5   :  { %v2617_v3 = vpack.c.bf16 %v591_v60, %v589_v59  ;;  %v604_v59 = vld [vmem:[#allocation8 + $0x2b8] sm:$0xff] }
 0x249   :  { %v2318_v63 = vpop.f32.mrb[0].mxu0 }
 0x24a   :  { %v680_v34 = vpop.f32.mrb[1].mxu0 }
 0x24b   :  { %914 = vmatprep.mubr.f32.mxu0 %v680_v34  ;;  %v2619_v34 = vpack.c.bf16 %v596_v33, %v594_v8 }
 0x24c   :  { %915 = vmatmul.mubr.f32.vlgmr.msra.gmra.mrb[32].mxu0 %v3370_v20 }
 0x24d   :  { %920 = vmatprep.mubr.f32.mxu0 %v2318_v63  ;;  %v2321_v43 = vpop.f32.mrb[2].mxu0  ;;  %2610 = vmatpush1.bf16.msra.mxu0 %v2609_v21  ;;  %v593_v63 = vld [vmem:[#allocation8 + $0x260] sm:$0xff]  ;;  %v598_v21 = vld [vmem:[#allocation8 + $0x288] sm:$0xff] }
 0x24e   :  { %v690_v7 = vpop.f32.mrb[3].mxu0  ;;  %2612 = vmatprep.subr.bf16.mxu0 %v2611_v36  ;;  %v2621_v25 = vpack.c.bf16 %v595_v46, %v593_v63  ;;  %v2623_v1 = vpack.c.bf16 %v600_v39, %v598_v21  ;;  %v608_v46 = vld [vmem:[#allocation8 + $0x2d8] sm:$0xff] }
 0x250   :  { %921 = vmatmul.mubr.f32.gmra.mrb[34].mxu0 %v3365_v15 }
 0x251   :  { %926 = vmatprep.mubr.f32.mxu0 %v690_v7  ;;  %v2324_v18 = vpop.f32.mrb[4].mxu0  ;;  %2614 = vmatpush1.bf16.msra.mxu0 %v2613_v16  ;;  %v597_v7 = vld [vmem:[#allocation8 + $0x280] sm:$0xff]  ;;  %v602_v16 = vld [vmem:[#allocation8 + $0x2a8] sm:$0xff] }
 0x252   :  { %v700_v10 = vpop.f32.mrb[5].mxu0  ;;  %2616 = vmatprep.subr.bf16.mxu0 %v2615_v55  ;;  %v2625_v55 = vpack.c.bf16 %v599_v12, %v597_v7  ;;  %v2627_v33 = vpack.c.bf16 %v604_v59, %v602_v16  ;;  %v612_v12 = vld [vmem:[#allocation8 + $0x2f8] sm:$0xff] }
 0x254   :  { %927 = vmatmul.mubr.f32.gmra.mrb[36].mxu0 %v3380_v28 }
 0x255   :  { %932 = vmatprep.mubr.f32.mxu0 %v2321_v43  ;;  %v2327_v19 = vpop.f32.mrb[6].mxu0  ;;  %2618 = vmatpush1.bf16.msra.mxu0 %v2617_v3  ;;  %v601_v43 = vld [vmem:[#allocation8 + $0x2a0] sm:$0xff]  ;;  %v606_v3 = vld [vmem:[#allocation8 + $0x2c8] sm:$0xff] }
 0x256   :  { %v710_v36 = vpop.f32.mrb[7].mxu0  ;;  %2620 = vmatprep.subr.bf16.mxu0 %v2619_v34  ;;  %v2629_v63 = vpack.c.bf16 %v603_v47, %v601_v43  ;;  %v2631_v39 = vpack.c.bf16 %v608_v46, %v606_v3 }
 0x258   :  { %933 = vmatmul.mubr.f32.gmra.mrb[38].mxu0 %v3375_v24 }
 0x259   :  { %938 = vmatprep.mubr.f32.mxu0 %v700_v10  ;;  %v2330_v8 = vpop.f32.mrb[8].mxu0  ;;  %2622 = vmatpush1.bf16.msra.mxu0 %v2621_v25  ;;  %v605_v10 = vld [vmem:[#allocation8 + $0x2c0] sm:$0xff]  ;;  %v610_v25 = vld [vmem:[#allocation8 + $0x2e8] sm:$0xff] }
 0x25a   :  { %v720_v60 = vpop.f32.mrb[9].mxu0  ;;  %2624 = vmatprep.subr.bf16.mxu0 %v2623_v1  ;;  %v2633_v7 = vpack.c.bf16 %v607_v30, %v605_v10  ;;  %v2635_v59 = vpack.c.bf16 %v612_v12, %v610_v25 }
 0x25c   :  { %939 = vmatmul.mubr.f32.gmra.mrb[40].mxu0 %v3388_v35 }
 0x25d   :  { %944 = vmatprep.mubr.f32.mxu0 %v2324_v18  ;;  %v2333_v34 = vpop.f32.mrb[10].mxu0  ;;  %2626 = vmatpush1.bf16.msra.mxu0 %v2625_v55  ;;  %v609_v18 = vld [vmem:[#allocation8 + $0x2e0] sm:$0xff] }
 0x25e   :  { %v730_v21 = vpop.f32.mrb[11].mxu0  ;;  %2628 = vmatprep.subr.bf16.mxu0 %v2627_v33  ;;  %v2637_v55 = vpack.c.bf16 %v611_v58, %v609_v18  ;;  %v613_v18 = vld [vmem:[%s3841_s6] sm:$0x3] }
 0x260   :  { %945 = vmatmul.mubr.f32.gmra.mrb[42].mxu0 %v3385_v32 }
 0x261   :  { %950 = vmatprep.mubr.f32.mxu0 %v710_v36  ;;  %v2336_v1 = vpop.f32.mrb[12].mxu0  ;;  %2630 = vmatpush1.bf16.msra.mxu0 %v2629_v63 }
 0x262   :  { %v740_v16 = vpop.f32.mrb[13].mxu0  ;;  %2632 = vmatprep.subr.bf16.mxu0 %v2631_v39 }
 0x264   :  { %951 = vmatmul.mubr.f32.gmra.mrb[44].mxu0 %v3398_v44 }
 0x265   :  { %956 = vmatprep.mubr.f32.mxu0 %v2327_v19  ;;  %v2339_v47 = vpop.f32.mrb[14].mxu0  ;;  %2634 = vmatpush1.bf16.msra.mxu0 %v2633_v7  ;;  %v3862_v7 = vmov 0.0  }
 0x266   :  { %v750_v33 = vpop.f32.mrb[15].mxu0  ;;  %2636 = vmatprep.subr.bf16.mxu0 %v2635_v59 }
 0x268   :  { %957 = vmatmul.mubr.f32.gmra.mrb[46].mxu0 %v3395_v41 }
 0x269   :  { %962 = vmatprep.mubr.f32.mxu0 %v720_v60  ;;  %v2342_v36 = vpop.f32.mrb[16].mxu0  ;;  %2638 = vmatpush1.bf16.msra.mxu0 %v2637_v55 }
 0x26a   :  { %v760_v43 = vpop.f32.mrb[17].mxu0 }
 0x26c   :  { %963 = vmatmul.mubr.f32.gmra.mrb[48].mxu0 %v3408_v54 }
 0x26d   :  { %968 = vmatprep.mubr.f32.mxu0 %v2330_v8  ;;  %v2345_v30 = vpop.f32.mrb[18].mxu0 }
 0x26e   :  { %v770_v3 = vpop.f32.mrb[19].mxu0 }
 0x270   :  { %969 = vmatmul.mubr.f32.gmra.mrb[50].mxu0 %v3403_v48 }
 0x271   :  { %974 = vmatprep.mubr.f32.mxu0 %v730_v21  ;;  %v2348_v19 = vpop.f32.mrb[20].mxu0 }
 0x272   :  { %v780_v46 = vpop.f32.mrb[21].mxu0 }
 0x274   :  { %975 = vmatmul.mubr.f32.gmra.mrb[52].mxu0 %v3416_v2 }
 0x275   :  { %980 = vmatprep.mubr.f32.mxu0 %v2333_v34  ;;  %v2351_v58 = vpop.f32.mrb[22].mxu0 }
 0x276   :  { %v790_v63 = vpop.f32.mrb[23].mxu0 }
 0x278   :  { %981 = vmatmul.mubr.f32.gmra.mrb[54].mxu0 %v3413_v61 }
 0x279   :  { %986 = vmatprep.mubr.f32.mxu0 %v740_v16  ;;  %v2354_v60 = vpop.f32.mrb[24].mxu0 }
 0x27a   :  { %v800_v39 = vpop.f32.mrb[25].mxu0 }
 0x27c   :  { %987 = vmatmul.mubr.f32.gmra.mrb[56].mxu0 %v3427_v29 }
 0x27d   :  { %992 = vmatprep.mubr.f32.mxu0 %v2336_v1  ;;  %v2357_v8 = vpop.f32.mrb[26].mxu0  ;;  %v3854_v1 = vlaneseq }
 0x27e   :  { %v810_v10 = vpop.f32.mrb[27].mxu0 }
 0x27f   :  { %v3577_v16 = vshrl.u32 %v3854_v1, 7 }
 0x280   :  { %993 = vmatmul.mubr.f32.gmra.mrb[58].mxu0 %v3424_v22 }
 0x281   :  { %998 = vmatprep.mubr.f32.mxu0 %v750_v33  ;;  %v2360_v21 = vpop.f32.mrb[28].mxu0  ;;  %v842_v59 = vsub.s32 0, %v3577_v16 }
 0x282   :  { %v820_v25 = vpop.f32.mrb[29].mxu0 }
 0x283   :  { %v3586_v55 = vrot.slane %v613_v18, %v842_v59 }
 0x284   :  { %999 = vmatmul.mubr.f32.gmra.mrb[60].mxu0 %v3438_v50 }
 0x285   :  { %1004 = vmatprep.mubr.f32.mxu0 %v2339_v47  ;;  %v2363_v34 = vpop.f32.mrb[30].mxu0  ;;  %v846_v47 = vsub.s32 1, %v3577_v16 }
 0x286   :  { %v830_v12 = vpop.f32.mrb[31].mxu0 }
 0x287   :  { %v3590_v33 = vrot.slane %v613_v18, %v846_v47 }
 0x288   :  { %1005 = vmatmul.mubr.f32.gmra.mrb[62].mxu0 %v3433_v38 }
 0x289   :  { %1075 = vmatprep.mubr.f32.mxu0 %v3862_v7 }
 0x28c   :  { %1076 = vmatmul.mubr.f32.vlgmr.msra.gmra.mrb[32].mxu0 %v760_v43 }
 0x28d   :  { %1081 = vmatprep.mubr.f32.mxu0 %v3862_v7 }
 0x290   :  { %1082 = vmatmul.mubr.f32.gmra.mrb[34].mxu0 %v2342_v36 }
 0x291   :  { %1087 = vmatprep.mubr.f32.mxu0 %v3862_v7 }
 0x294   :  { %1088 = vmatmul.mubr.f32.gmra.mrb[36].mxu0 %v770_v3 }
 0x295   :  { %1093 = vmatprep.mubr.f32.mxu0 %v3862_v7 }
 0x298   :  { %1094 = vmatmul.mubr.f32.gmra.mrb[38].mxu0 %v2345_v30 }
 0x299   :  { %1099 = vmatprep.mubr.f32.mxu0 %v3862_v7 }
 0x29c   :  { %1100 = vmatmul.mubr.f32.gmra.mrb[40].mxu0 %v780_v46 }
 0x29d   :  { %1105 = vmatprep.mubr.f32.mxu0 %v3862_v7 }
 0x2a0   :  { %1106 = vmatmul.mubr.f32.gmra.mrb[42].mxu0 %v2348_v19 }
 0x2a1   :  { %1111 = vmatprep.mubr.f32.mxu0 %v3862_v7 }
 0x2a4   :  { %1112 = vmatmul.mubr.f32.gmra.mrb[44].mxu0 %v790_v63 }
 0x2a5   :  { %1117 = vmatprep.mubr.f32.mxu0 %v3862_v7 }
 0x2a8   :  { %1118 = vmatmul.mubr.f32.gmra.mrb[46].mxu0 %v2351_v58 }
 0x2a9   :  { %1123 = vmatprep.mubr.f32.mxu0 %v3862_v7 }
 0x2ac   :  { %1124 = vmatmul.mubr.f32.gmra.mrb[48].mxu0 %v800_v39 }
 0x2ad   :  { %1129 = vmatprep.mubr.f32.mxu0 %v3862_v7 }
 0x2b0   :  { %1130 = vmatmul.mubr.f32.gmra.mrb[50].mxu0 %v2354_v60 }
 0x2b1   :  { %1135 = vmatprep.mubr.f32.mxu0 %v3862_v7 }
 0x2b4   :  { %1136 = vmatmul.mubr.f32.gmra.mrb[52].mxu0 %v810_v10 }
 0x2b5   :  { %1141 = vmatprep.mubr.f32.mxu0 %v3862_v7 }
 0x2b8   :  { %1142 = vmatmul.mubr.f32.gmra.mrb[54].mxu0 %v2357_v8 }
 0x2b9   :  { %1147 = vmatprep.mubr.f32.mxu0 %v3862_v7 }
 0x2bc   :  { %1148 = vmatmul.mubr.f32.gmra.mrb[56].mxu0 %v820_v25 }
 0x2bd   :  { %1153 = vmatprep.mubr.f32.mxu0 %v3862_v7 }
 0x2c0   :  { %1154 = vmatmul.mubr.f32.gmra.mrb[58].mxu0 %v2360_v21 }
 0x2c1   :  { %1159 = vmatprep.mubr.f32.mxu0 %v3862_v7 }
 0x2c4   :  { %1160 = vmatmul.mubr.f32.gmra.mrb[60].mxu0 %v830_v12 }
 0x2c5   :  { %1165 = vmatprep.mubr.f32.mxu0 %v3862_v7 }
 0x2c8   :  { %1166 = vmatmul.mubr.f32.gmra.mrb[62].mxu0 %v2363_v34 }
 0x2c9   :  { %2476 = vmatprep.mubr.msk.f32.mxu0 %vm3126_vm0, %v3862_v7 }
 0x35f   :  { %v1077_v36 = vpop.f32.mrb[32].mxu0 }
 0x360   :  { %v2791_v43 = vadd.f32 %v1077_v36, %v3586_v55  ;;  %v1079_v30 = vpop.f32.mrb[33].mxu0 }
 0x361   :  { %v2792_v3 = vadd.f32 %v1079_v30, %v3590_v33 }
 0x362   :  { %v1172_v19 = vmax.f32 %v2791_v43, 0.0 }
 0x363   :  { %v1173_v46 = vmax.f32 %v2792_v3, 0.0  ;;  %v1083_v58 = vpop.f32.mrb[34].mxu0 }
 0x364   :  { %v2793_v63 = vadd.f32 %v1083_v58, %v3586_v55  ;;  %v1085_v60 = vpop.f32.mrb[35].mxu0 }
 0x365   :  { %v1204_v39 = vadd.f32 %v1173_v46, %v1172_v19  ;;  %v2794_v8 = vadd.f32 %v1085_v60, %v3590_v33 }
 0x366   :  { %v1174_v10 = vmax.f32 %v2793_v63, 0.0 }
 0x367   :  { %v1175_v21 = vmax.f32 %v2794_v8, 0.0  ;;  %v1089_v25 = vpop.f32.mrb[36].mxu0  ;;  %v3599_v43 = vadd.f32 %v1204_v39, %v3370_v20 }
 0x368   :  { %v2795_v34 = vadd.f32 %v1089_v25, %v3586_v55  ;;  %v1091_v12 = vpop.f32.mrb[37].mxu0 }
 0x369   :  { %v1205_v18 = vadd.f32 %v1175_v21, %v1174_v10  ;;  %v2796_v36 = vadd.f32 %v1091_v12, %v3590_v33 }
 0x36a   :  { %v1176_v1 = vmax.f32 %v2795_v34, 0.0 }
 0x36b   :  { %v3602_v30 = vadd.f32 %v1205_v18, %v3365_v15  ;;  %v1177_v3 = vmax.f32 %v2796_v36, 0.0  ;;  %v1095_v19 = vpop.f32.mrb[38].mxu0 }
 0x36c   :  { %v2797_v46 = vadd.f32 %v1095_v19, %v3586_v55  ;;  %v1097_v58 = vpop.f32.mrb[39].mxu0 }
 0x36d   :  { %v1206_v63 = vadd.f32 %v1177_v3, %v1176_v1  ;;  %v2798_v60 = vadd.f32 %v1097_v58, %v3590_v33  ;;  %v2639_v8 = vpack.c.bf16 %v3602_v30, %v3599_v43 }
 0x36e   :  { %v1178_v10 = vmax.f32 %v2797_v46, 0.0 }
 0x36f   :  { %v1179_v21 = vmax.f32 %v2798_v60, 0.0  ;;  %v1101_v25 = vpop.f32.mrb[40].mxu0  ;;  %2640 = vmatprep.subr.bf16.mxu1 %v2639_v8  ;;  %v3611_v18 = vadd.f32 %v1206_v63, %v3380_v28 }
 0x370   :  { %v2799_v20 = vadd.f32 %v1101_v25, %v3586_v55  ;;  %v1103_v39 = vpop.f32.mrb[41].mxu0  ;;  %2642 = vmatpush3.bf16.msra.mxu1 %v2639_v8 }
 0x371   :  { %v1207_v15 = vadd.f32 %v1179_v21, %v1178_v10  ;;  %v2800_v34 = vadd.f32 %v1103_v39, %v3590_v33 }
 0x372   :  { %v1180_v12 = vmax.f32 %v2799_v20, 0.0 }
 0x373   :  { %v3614_v1 = vadd.f32 %v1207_v15, %v3375_v24  ;;  %v1181_v36 = vmax.f32 %v2800_v34, 0.0  ;;  %v1107_v3 = vpop.f32.mrb[42].mxu0 }
 0x374   :  { %v2801_v19 = vadd.f32 %v1107_v3, %v3586_v55  ;;  %v1109_v46 = vpop.f32.mrb[43].mxu0 }
 0x375   :  { %v1208_v58 = vadd.f32 %v1181_v36, %v1180_v12  ;;  %v2802_v60 = vadd.f32 %v1109_v46, %v3590_v33  ;;  %v2643_v8 = vpack.c.bf16 %v3614_v1, %v3611_v18 }
 0x376   :  { %v1182_v10 = vmax.f32 %v2801_v19, 0.0 }
 0x377   :  { %v1183_v21 = vmax.f32 %v2802_v60, 0.0  ;;  %v1113_v25 = vpop.f32.mrb[44].mxu0  ;;  %2644 = vmatprep.subr.bf16.mxu1 %v2643_v8  ;;  %v3623_v15 = vadd.f32 %v1208_v58, %v3388_v35 }
 0x378   :  { %v2803_v28 = vadd.f32 %v1113_v25, %v3586_v55  ;;  %v1115_v63 = vpop.f32.mrb[45].mxu0  ;;  %2646 = vmatpush3.bf16.msra.mxu1 %v2643_v8 }
 0x379   :  { %v1209_v24 = vadd.f32 %v1183_v21, %v1182_v10  ;;  %v2804_v20 = vadd.f32 %v1115_v63, %v3590_v33 }
 0x37a   :  { %v1184_v39 = vmax.f32 %v2803_v28, 0.0 }
 0x37b   :  { %v3626_v34 = vadd.f32 %v1209_v24, %v3385_v32  ;;  %v1185_v12 = vmax.f32 %v2804_v20, 0.0  ;;  %v1119_v36 = vpop.f32.mrb[46].mxu0 }
 0x37c   :  { %v2805_v3 = vadd.f32 %v1119_v36, %v3586_v55  ;;  %v1121_v19 = vpop.f32.mrb[47].mxu0 }
 0x37d   :  { %v1210_v46 = vadd.f32 %v1185_v12, %v1184_v39  ;;  %v2806_v60 = vadd.f32 %v1121_v19, %v3590_v33  ;;  %v2647_v8 = vpack.c.bf16 %v3626_v34, %v3623_v15 }
 0x37e   :  { %v1186_v10 = vmax.f32 %v2805_v3, 0.0 }
 0x37f   :  { %v1187_v21 = vmax.f32 %v2806_v60, 0.0  ;;  %v1125_v25 = vpop.f32.mrb[48].mxu0  ;;  %2648 = vmatprep.subr.bf16.mxu1 %v2647_v8  ;;  %v3635_v24 = vadd.f32 %v1210_v46, %v3398_v44 }
 0x380   :  { %v2807_v35 = vadd.f32 %v1125_v25, %v3586_v55  ;;  %v1127_v58 = vpop.f32.mrb[49].mxu0  ;;  %2650 = vmatpush3.bf16.msra.mxu1 %v2647_v8 }
 0x381   :  { %v1211_v32 = vadd.f32 %v1187_v21, %v1186_v10  ;;  %v2808_v28 = vadd.f32 %v1127_v58, %v3590_v33 }
 0x382   :  { %v1188_v63 = vmax.f32 %v2807_v35, 0.0 }
 0x383   :  { %v3638_v20 = vadd.f32 %v1211_v32, %v3395_v41  ;;  %v1189_v39 = vmax.f32 %v2808_v28, 0.0  ;;  %v1131_v12 = vpop.f32.mrb[50].mxu0 }
 0x384   :  { %v2809_v36 = vadd.f32 %v1131_v12, %v3586_v55  ;;  %v1133_v3 = vpop.f32.mrb[51].mxu0 }
 0x385   :  { %v1212_v19 = vadd.f32 %v1189_v39, %v1188_v63  ;;  %v2810_v60 = vadd.f32 %v1133_v3, %v3590_v33  ;;  %v2651_v8 = vpack.c.bf16 %v3638_v20, %v3635_v24 }
 0x386   :  { %v1190_v10 = vmax.f32 %v2809_v36, 0.0 }
 0x387   :  { %v1191_v21 = vmax.f32 %v2810_v60, 0.0  ;;  %v1137_v25 = vpop.f32.mrb[52].mxu0  ;;  %2652 = vmatprep.subr.bf16.mxu1 %v2651_v8  ;;  %v3647_v32 = vadd.f32 %v1212_v19, %v3408_v54 }
 0x388   :  { %v2811_v44 = vadd.f32 %v1137_v25, %v3586_v55  ;;  %v1139_v46 = vpop.f32.mrb[53].mxu0  ;;  %2654 = vmatpush3.bf16.msra.mxu1 %v2651_v8 }
 0x389   :  { %v1213_v41 = vadd.f32 %v1191_v21, %v1190_v10  ;;  %v2812_v35 = vadd.f32 %v1139_v46, %v3590_v33 }
 0x38a   :  { %v1192_v58 = vmax.f32 %v2811_v44, 0.0 }
 0x38b   :  { %v3650_v28 = vadd.f32 %v1213_v41, %v3403_v48  ;;  %v1193_v63 = vmax.f32 %v2812_v35, 0.0  ;;  %v1143_v39 = vpop.f32.mrb[54].mxu0 }
 0x38c   :  { %v2813_v12 = vadd.f32 %v1143_v39, %v3586_v55  ;;  %v1145_v36 = vpop.f32.mrb[55].mxu0 }
 0x38d   :  { %v1214_v3 = vadd.f32 %v1193_v63, %v1192_v58  ;;  %v2814_v60 = vadd.f32 %v1145_v36, %v3590_v33  ;;  %v2655_v8 = vpack.c.bf16 %v3650_v28, %v3647_v32 }
 0x38e   :  { %v1194_v10 = vmax.f32 %v2813_v12, 0.0 }
 0x38f   :  { %v1195_v21 = vmax.f32 %v2814_v60, 0.0  ;;  %v1149_v25 = vpop.f32.mrb[56].mxu0  ;;  %2656 = vmatprep.subr.bf16.mxu1 %v2655_v8  ;;  %v3659_v41 = vadd.f32 %v1214_v3, %v3416_v2 }
 0x390   :  { %v2815_v54 = vadd.f32 %v1149_v25, %v3586_v55  ;;  %v1151_v19 = vpop.f32.mrb[57].mxu0  ;;  %2658 = vmatpush3.bf16.msra.mxu1 %v2655_v8 }
 0x391   :  { %v1215_v48 = vadd.f32 %v1195_v21, %v1194_v10  ;;  %v2816_v44 = vadd.f32 %v1151_v19, %v3590_v33 }
 0x392   :  { %v1196_v46 = vmax.f32 %v2815_v54, 0.0 }
 0x393   :  { %v3662_v35 = vadd.f32 %v1215_v48, %v3413_v61  ;;  %v1197_v58 = vmax.f32 %v2816_v44, 0.0  ;;  %v1155_v63 = vpop.f32.mrb[58].mxu0 }
 0x394   :  { %v2817_v39 = vadd.f32 %v1155_v63, %v3586_v55  ;;  %v1157_v12 = vpop.f32.mrb[59].mxu0 }
 0x395   :  { %v1216_v36 = vadd.f32 %v1197_v58, %v1196_v46  ;;  %v2818_v60 = vadd.f32 %v1157_v12, %v3590_v33  ;;  %v2659_v8 = vpack.c.bf16 %v3662_v35, %v3659_v41 }
 0x396   :  { %v1198_v10 = vmax.f32 %v2817_v39, 0.0 }
 0x397   :  { %v1199_v21 = vmax.f32 %v2818_v60, 0.0  ;;  %v1161_v25 = vpop.f32.mrb[60].mxu0  ;;  %2660 = vmatprep.subr.bf16.mxu1 %v2659_v8  ;;  %v3671_v48 = vadd.f32 %v1216_v36, %v3427_v29  ;;  %v1237_v36 = vld [vmem:[#allocation10 + $0x8] sm:$0xff] }
 0x398   :  { %v2819_v2 = vadd.f32 %v1161_v25, %v3586_v55  ;;  %v1163_v3 = vpop.f32.mrb[61].mxu0  ;;  %2662 = vmatpush3.bf16.msra.mxu1 %v2659_v8  ;;  %v1239_v25 = vld [vmem:[#allocation10 + $0x18] sm:$0xff] }
 0x399   :  { %v1217_v61 = vadd.f32 %v1199_v21, %v1198_v10  ;;  %v2820_v54 = vadd.f32 %v1163_v3, %v3590_v33  ;;  %v1236_v3 = vld [vmem:[#allocation10] sm:$0xff] }
 0x39a   :  { %v1200_v19 = vmax.f32 %v2819_v2, 0.0 }
 0x39b   :  { %v3674_v44 = vadd.f32 %v1217_v61, %v3424_v22  ;;  %v1201_v46 = vmax.f32 %v2820_v54, 0.0  ;;  %v1167_v58 = vpop.f32.mrb[62].mxu0  ;;  %v1238_v61 = vld [vmem:[#allocation10 + $0x10] sm:$0xff]  ;;  %v1241_v54 = vld [vmem:[#allocation10 + $0x28] sm:$0xff] }
 0x39c   :  { %v2821_v63 = vadd.f32 %v1167_v58, %v3586_v55  ;;  %v1169_v39 = vpop.f32.mrb[63].mxu0 }
 0x39d   :  { %v1218_v12 = vadd.f32 %v1201_v46, %v1200_v19  ;;  %v2822_v60 = vadd.f32 %v1169_v39, %v3590_v33  ;;  %v2663_v8 = vpack.c.bf16 %v3674_v44, %v3671_v48  ;;  %v2671_v33 = vpack.c.bf16 %v1239_v25, %v1237_v36  ;;  %v1243_v19 = vld [vmem:[#allocation10 + $0x38] sm:$0xff]  ;;  %v1242_v39 = vld [vmem:[#allocation10 + $0x30] sm:$0xff] }
 0x39e   :  { %v1202_v10 = vmax.f32 %v2821_v63, 0.0  ;;  %v2673_v46 = vpack.c.bf16 %v1238_v61, %v1236_v3  ;;  %v2675_v58 = vpack.c.bf16 %v1243_v19, %v1241_v54  ;;  %v1240_v63 = vld [vmem:[#allocation10 + $0x20] sm:$0xff]  ;;  %v1257_v19 = vld [vmem:[#allocation10 + $0xa8] sm:$0xff] }
 0x39f   :  { %v1203_v21 = vmax.f32 %v2822_v60, 0.0  ;;  %2664 = vmatprep.subr.bf16.mxu1 %v2663_v8  ;;  %v3681_v22 = vadd.f32 %v1218_v12, %v3438_v50  ;;  %v1245_v50 = vld [vmem:[#allocation10 + $0x48] sm:$0xff]  ;;  %v1247_v12 = vld [vmem:[#allocation10 + $0x58] sm:$0xff]  ;;  %v1252_v54 = vld [vmem:[#allocation10 + $0x80] sm:$0xff] }
 0x3a0   :  { %2666 = vmatpush3.bf16.msra.mxu1 %v2663_v8  ;;  %v2679_v60 = vpack.c.bf16 %v1247_v12, %v1245_v50  ;;  %v1244_v8 = vld [vmem:[#allocation10 + $0x40] sm:$0xff] }
 0x3a1   :  { %v1219_v29 = vadd.f32 %v1203_v21, %v1202_v10  ;;  %v1246_v10 = vld [vmem:[#allocation10 + $0x50] sm:$0xff]  ;;  %v1249_v21 = vld [vmem:[#allocation10 + $0x68] sm:$0xff] }
 0x3a2   :  { %v2681_v36 = vpack.c.bf16 %v1246_v10, %v1244_v8 }
 0x3a3   :  { %v3684_v2 = vadd.f32 %v1219_v29, %v3433_v38  ;;  %v2677_v38 = vpack.c.bf16 %v1242_v39, %v1240_v63  ;;  %v1251_v29 = vld [vmem:[#allocation10 + $0x78] sm:$0xff]  ;;  %v1256_v63 = vld [vmem:[#allocation10 + $0xa0] sm:$0xff]  ;;  %v1261_v39 = vld [vmem:[#allocation10 + $0xc8] sm:$0xff] }
 0x3a4   :  { %v2683_v25 = vpack.c.bf16 %v1251_v29, %v1249_v21  ;;  %v1264_v21 = vld [vmem:[#allocation10 + $0xe0] sm:$0xff]  ;;  %v1269_v29 = vld [vmem:[#allocation10 + $0x108] sm:$0xff] }
 0x3a5   :  { %v2667_v55 = vpack.c.bf16 %v3684_v2, %v3681_v22 }
 0x3a7   :  { %2668 = vmatprep.subr.bf16.mxu1 %v2667_v55 }
 0x3a8   :  { %2670 = vmatpush3.bf16.msra.mxu1 %v2667_v55  ;;  %v1248_v55 = vld [vmem:[#allocation10 + $0x60] sm:$0xff] }
 0x3a9   :  { %2672 = vmatprep.subr.bf16.mxu1 %v2671_v33  ;;  %v1253_v33 = vld [vmem:[#allocation10 + $0x88] sm:$0xff] }
 0x3ab   :  { %2397 = vmatmul.mubr.f32.vlgmr.msra.gmra.mrb[16].mxu1 %v3444_v11  ;;  %v1250_v11 = vld [vmem:[#allocation10 + $0x70] sm:$0xff] }
 0x3ac   :  { %2399 = vmatprep.mubr.f32.mxu1 %v3448_v23  ;;  %2674 = vmatpush1.bf16.msra.mxu1 %v2673_v46  ;;  %v1255_v23 = vld [vmem:[#allocation10 + $0x98] sm:$0xff]  ;;  %v2685_v3 = vpack.c.bf16 %v1250_v11, %v1248_v55  ;;  %v1268_v55 = vld [vmem:[#allocation10 + $0x100] sm:$0xff]  ;;  %v1273_v11 = vld [vmem:[#allocation10 + $0x128] sm:$0xff] }
 0x3ad   :  { %2676 = vmatprep.subr.bf16.mxu1 %v2675_v58  ;;  %v2687_v61 = vpack.c.bf16 %v1255_v23, %v1253_v33 }
 0x3af   :  { %2400 = vmatmul.mubr.f32.gmra.mrb[18].mxu1 %v3454_v9  ;;  %v1254_v9 = vld [vmem:[#allocation10 + $0x90] sm:$0xff] }
 0x3b0   :  { %2402 = vmatprep.mubr.f32.mxu1 %v3459_v52  ;;  %2678 = vmatpush1.bf16.msra.mxu1 %v2677_v38  ;;  %v1259_v52 = vld [vmem:[#allocation10 + $0xb8] sm:$0xff]  ;;  %v2689_v46 = vpack.c.bf16 %v1254_v9, %v1252_v54  ;;  %v1260_v38 = vld [vmem:[#allocation10 + $0xc0] sm:$0xff] }
 0x3b1   :  { %2680 = vmatprep.subr.bf16.mxu1 %v2679_v60  ;;  %v2691_v58 = vpack.c.bf16 %v1259_v52, %v1257_v19  ;;  %v1265_v60 = vld [vmem:[#allocation10 + $0xe8] sm:$0xff]  ;;  %v1276_v19 = vld [vmem:[#allocation10 + $0x140] sm:$0xff] }
 0x3b2   :  { %v1281_v52 = vld [vmem:[#allocation10 + $0x168] sm:$0xff] }
 0x3b3   :  { %2403 = vmatmul.mubr.f32.gmra.mrb[20].mxu1 %v3465_v5  ;;  %v1258_v5 = vld [vmem:[#allocation10 + $0xb0] sm:$0xff] }
 0x3b4   :  { %2405 = vmatprep.mubr.f32.mxu1 %v3470_v13  ;;  %2682 = vmatpush1.bf16.msra.mxu1 %v2681_v36  ;;  %v1263_v13 = vld [vmem:[#allocation10 + $0xd8] sm:$0xff]  ;;  %v2693_v50 = vpack.c.bf16 %v1258_v5, %v1256_v63  ;;  %v1280_v63 = vld [vmem:[#allocation10 + $0x160] sm:$0xff]  ;;  %v1285_v5 = vld [vmem:[#allocation10 + $0x188] sm:$0xff] }
 0x3b5   :  { %2684 = vmatprep.subr.bf16.mxu1 %v2683_v25  ;;  %v2695_v12 = vpack.c.bf16 %v1263_v13, %v1261_v39 }
 0x3b7   :  { %2406 = vmatmul.mubr.f32.gmra.mrb[22].mxu1 %v3474_v14  ;;  %v1262_v14 = vld [vmem:[#allocation10 + $0xd0] sm:$0xff] }
 0x3b8   :  { %2408 = vmatprep.mubr.f32.mxu1 %v3478_v31  ;;  %2686 = vmatpush1.bf16.msra.mxu1 %v2685_v3  ;;  %v1267_v31 = vld [vmem:[#allocation10 + $0xf8] sm:$0xff]  ;;  %v2697_v8 = vpack.c.bf16 %v1262_v14, %v1260_v38  ;;  %v1272_v3 = vld [vmem:[#allocation10 + $0x120] sm:$0xff] }
 0x3b9   :  { %2688 = vmatprep.subr.bf16.mxu1 %v2687_v61  ;;  %v2699_v10 = vpack.c.bf16 %v1267_v31, %v1265_v60  ;;  %v1277_v61 = vld [vmem:[#allocation10 + $0x148] sm:$0xff]  ;;  %v1288_v60 = vld [vmem:[#allocation10 + $0x1a0] sm:$0xff] }
 0x3ba   :  { %v1293_v31 = vld [vmem:[#allocation10 + $0x1c8] sm:$0xff] }
 0x3bb   :  { %2409 = vmatmul.mubr.f32.gmra.mrb[24].mxu1 %v3484_v62  ;;  %v1266_v62 = vld [vmem:[#allocation10 + $0xf0] sm:$0xff] }
 0x3bc   :  { %2411 = vmatprep.mubr.f32.mxu1 %v3488_v40  ;;  %2690 = vmatpush1.bf16.msra.mxu1 %v2689_v46  ;;  %v1271_v40 = vld [vmem:[#allocation10 + $0x118] sm:$0xff]  ;;  %v2701_v36 = vpack.c.bf16 %v1266_v62, %v1264_v21 }
 0x3bd   :  { %2692 = vmatprep.subr.bf16.mxu1 %v2691_v58  ;;  %v2703_v25 = vpack.c.bf16 %v1271_v40, %v1269_v29  ;;  %v1292_v29 = vld [vmem:[#allocation10 + $0x1c0] sm:$0xff]  ;;  %v1297_v40 = vld [vmem:[#allocation10 + $0x1e8] sm:$0xff] }
 0x3bf   :  { %2412 = vmatmul.mubr.f32.gmra.mrb[26].mxu1 %v3494_v42  ;;  %v1270_v42 = vld [vmem:[#allocation10 + $0x110] sm:$0xff] }
 0x3c0   :  { %2414 = vmatprep.mubr.f32.mxu1 %v3498_v49  ;;  %2694 = vmatpush1.bf16.msra.mxu1 %v2693_v50  ;;  %v1275_v49 = vld [vmem:[#allocation10 + $0x138] sm:$0xff]  ;;  %v2705_v33 = vpack.c.bf16 %v1270_v42, %v1268_v55  ;;  %v1284_v50 = vld [vmem:[#allocation10 + $0x180] sm:$0xff] }
 0x3c1   :  { %2696 = vmatprep.subr.bf16.mxu1 %v2695_v12  ;;  %v2707_v23 = vpack.c.bf16 %v1275_v49, %v1273_v11  ;;  %v1289_v12 = vld [vmem:[#allocation10 + $0x1a8] sm:$0xff]  ;;  %v3868_v49 = vld [vmem:[#allocation21_spill] sm:$0xff] }
 0x3c2   :  { %v3867_v11 = vld [vmem:[#allocation20_spill] sm:$0xff] }
 0x3c3   :  { %2415 = vmatmul.mubr.f32.gmra.mrb[28].mxu1 %v3502_v51  ;;  %v1274_v51 = vld [vmem:[#allocation10 + $0x130] sm:$0xff] }
 0x3c4   :  { %2417 = vmatprep.mubr.f32.mxu1 %v3506_v56  ;;  %2698 = vmatpush1.bf16.msra.mxu1 %v2697_v8  ;;  %v1279_v56 = vld [vmem:[#allocation10 + $0x158] sm:$0xff]  ;;  %v2709_v54 = vpack.c.bf16 %v1274_v51, %v1272_v3  ;;  %v3863_v8 = vld [vmem:[#allocation16_spill] sm:$0xff]  ;;  %v1298_v3 = vld [vmem:[#allocation10 + $0x1f0] sm:$0xff] }
 0x3c5   :  { %2700 = vmatprep.subr.bf16.mxu1 %v2699_v10  ;;  %v2711_v9 = vpack.c.bf16 %v1279_v56, %v1277_v61  ;;  %v3864_v10 = vld [vmem:[#allocation17_spill] sm:$0xff]  ;;  %v1301_v61 = vld [vmem:[#allocation10 + $0x208] sm:$0xff]  ;;  %v1303_v56 = vld [vmem:[#allocation10 + $0x218] sm:$0xff] }
 0x3c7   :  { %2418 = vmatmul.mubr.f32.gmra.mrb[30].mxu1 %v3512_v57  ;;  %v1278_v57 = vld [vmem:[#allocation10 + $0x150] sm:$0xff] }
 0x3c8   :  { %2420 = vmatprep.mubr.f32.mxu1 %v3377_v27  ;;  %2702 = vmatpush1.bf16.msra.mxu1 %v2701_v36  ;;  %v1283_v27 = vld [vmem:[#allocation10 + $0x178] sm:$0xff]  ;;  %v2713_v46 = vpack.c.bf16 %v1278_v57, %v1276_v19  ;;  %v1302_v19 = vld [vmem:[#allocation10 + $0x210] sm:$0xff]  ;;  %v1305_v57 = vld [vmem:[#allocation10 + $0x228] sm:$0xff] }
 0x3c9   :  { %2704 = vmatprep.subr.bf16.mxu1 %v2703_v25  ;;  %v2715_v58 = vpack.c.bf16 %v1283_v27, %v1281_v52  ;;  %v3865_v36 = vld [vmem:[#allocation18_spill] sm:$0xff]  ;;  %v3866_v25 = vld [vmem:[#allocation19_spill] sm:$0xff] }
 0x3ca   :  { %v1307_v52 = vld [vmem:[#allocation10 + $0x238] sm:$0xff]  ;;  %v1955_v27 = vld [vmem:[%s3835_s0] sm:$0xff] }
 0x3cb   :  { %2421 = vmatmul.mubr.f32.gmra.mrb[32].mxu1 %v3390_v37  ;;  %v1282_v37 = vld [vmem:[#allocation10 + $0x170] sm:$0xff] }
 0x3cc   :  { %2423 = vmatprep.mubr.f32.mxu1 %v3405_v53  ;;  %2706 = vmatpush1.bf16.msra.mxu1 %v2705_v33  ;;  %v1287_v53 = vld [vmem:[#allocation10 + $0x198] sm:$0xff]  ;;  %v2717_v39 = vpack.c.bf16 %v1282_v37, %v1280_v63  ;;  %v3124_v63 = vmov 0  }
 0x3cd   :  { %2708 = vmatprep.subr.bf16.mxu1 %v2707_v23  ;;  %v2719_v13 = vpack.c.bf16 %v1287_v53, %v1285_v5  ;;  %v3869_v33 = vld [vmem:[#allocation22_spill] sm:$0xff]  ;;  %v1296_v23 = vld [vmem:[#allocation10 + $0x1e0] sm:$0xff]  ;;  %2934 = vset.pattern.permute.xlu1 %v3124_v63  ;;  %v2739_v5 = vpack.c.bf16 %v1307_v52, %v1305_v57 }
 0x3ce   :  { %v2733_v51 = vpack.c.bf16 %v1298_v3, %v1296_v23  ;;  %2935 = vset.pattern.permute.xlu0 %v3124_v63  ;;  %v1304_v53 = vld [vmem:[#allocation10 + $0x220] sm:$0xff]  ;;  %1959 = vperm.xlu1 %2934, %v1955_v27   ;;  %v1326_v63 = vld [vmem:[#allocation10 + $0x2d0] sm:$0xff] }
 0x3cf   :  { %2424 = vmatmul.mubr.f32.gmra.mrb[34].mxu1 %v3419_v4  ;;  %v1286_v4 = vld [vmem:[#allocation10 + $0x190] sm:$0xff] }
 0x3d0   :  { %2426 = vmatprep.mubr.f32.mxu1 %v3435_v45  ;;  %2710 = vmatpush1.bf16.msra.mxu1 %v2709_v54  ;;  %v1291_v45 = vld [vmem:[#allocation10 + $0x1b8] sm:$0xff]  ;;  %v2721_v38 = vpack.c.bf16 %v1286_v4, %v1284_v50  ;;  %v2735_v54 = vpack.c.bf16 %v1303_v56, %v1301_v61  ;;  %v1320_v56 = vld [vmem:[#allocation10 + $0x2a0] sm:$0xff] }
 0x3d1   :  { %2712 = vmatprep.subr.bf16.mxu1 %v2711_v9  ;;  %v2723_v14 = vpack.c.bf16 %v1291_v45, %v1289_v12  ;;  %v1300_v9 = vld [vmem:[#allocation10 + $0x200] sm:$0xff]  ;;  %v1311_v50 = vld [vmem:[#allocation10 + $0x258] sm:$0xff] }
 0x3d3   :  { %2427 = vmatmul.mubr.f32.gmra.mrb[36].mxu1 %v3450_v26  ;;  %v1290_v26 = vld [vmem:[#allocation10 + $0x1b0] sm:$0xff] }
 0x3d4   :  { %2429 = vmatprep.mubr.f32.mxu1 %v3461_v0  ;;  %2714 = vmatpush1.bf16.msra.mxu1 %v2713_v46  ;;  %v1295_v0 = vld [vmem:[#allocation10 + $0x1d8] sm:$0xff]  ;;  %v2725_v21 = vpack.c.bf16 %v1290_v26, %v1288_v60  ;;  %v1310_v60 = vld [vmem:[#allocation10 + $0x250] sm:$0xff]  ;;  %v1313_v26 = vld [vmem:[#allocation10 + $0x268] sm:$0xff] }
 0x3d5   :  { %2716 = vmatprep.subr.bf16.mxu1 %v2715_v58  ;;  %v2727_v62 = vpack.c.bf16 %v1295_v0, %v1293_v31  ;;  %v2737_v58 = vpack.c.bf16 %v1302_v19, %v1300_v9  ;;  %v1315_v31 = vld [vmem:[#allocation10 + $0x278] sm:$0xff]  ;;  %v1325_v9 = vld [vmem:[#allocation10 + $0x2c8] sm:$0xff] }
 0x3d6   :  { %v1327_v19 = vld [vmem:[#allocation10 + $0x2d8] sm:$0xff] }
 0x3d7   :  { %2430 = vmatmul.mubr.f32.gmra.mrb[38].mxu1 %v3480_v17  ;;  %v1294_v17 = vld [vmem:[#allocation10 + $0x1d0] sm:$0xff] }
 0x3d8   :  { %2432 = vmatprep.mubr.f32.mxu1 %v3490_v6  ;;  %2718 = vmatpush1.bf16.msra.mxu1 %v2717_v39  ;;  %v1299_v6 = vld [vmem:[#allocation10 + $0x1f8] sm:$0xff]  ;;  %v2729_v55 = vpack.c.bf16 %v1294_v17, %v1292_v29  ;;  %v1306_v39 = vld [vmem:[#allocation10 + $0x230] sm:$0xff]  ;;  %v1317_v17 = vld [vmem:[#allocation10 + $0x288] sm:$0xff] }
 0x3d9   :  { %2720 = vmatprep.subr.bf16.mxu1 %v2719_v13  ;;  %v2731_v42 = vpack.c.bf16 %v1299_v6, %v1297_v40  ;;  %v1309_v13 = vld [vmem:[#allocation10 + $0x248] sm:$0xff]  ;;  %v2741_v12 = vpack.c.bf16 %v1306_v39, %v1304_v53  ;;  %v1314_v29 = vld [vmem:[#allocation10 + $0x270] sm:$0xff]  ;;  %v1319_v40 = vld [vmem:[#allocation10 + $0x298] sm:$0xff] }
 0x3db   :  { %2433 = vmatmul.mubr.f32.gmra.mrb[40].mxu1 %v3863_v8 }
 0x3dc   :  { %2435 = vmatprep.mubr.f32.mxu1 %v3864_v10  ;;  %2722 = vmatpush1.bf16.msra.mxu1 %v2721_v38  ;;  %v2743_v38 = vpack.c.bf16 %v1311_v50, %v1309_v13 }
 0x3dd   :  { %2724 = vmatprep.subr.bf16.mxu1 %v2723_v14  ;;  %v1308_v14 = vld [vmem:[#allocation10 + $0x240] sm:$0xff] }
 0x3de   :  { %v2745_v8 = vpack.c.bf16 %v1310_v60, %v1308_v14 }
 0x3df   :  { %2436 = vmatmul.mubr.f32.gmra.mrb[42].mxu1 %v3865_v36 }
 0x3e0   :  { %2438 = vmatprep.mubr.f32.mxu1 %v3866_v25  ;;  %2726 = vmatpush1.bf16.msra.mxu1 %v2725_v21  ;;  %v2747_v21 = vpack.c.bf16 %v1315_v31, %v1313_v26 }
 0x3e1   :  { %2728 = vmatprep.subr.bf16.mxu1 %v2727_v62  ;;  %v1312_v62 = vld [vmem:[#allocation10 + $0x260] sm:$0xff] }
 0x3e2   :  { %v2749_v36 = vpack.c.bf16 %v1314_v29, %v1312_v62 }
 0x3e3   :  { %2439 = vmatmul.mubr.f32.gmra.mrb[44].mxu1 %v3867_v11  ;;  %v1318_v11 = vld [vmem:[#allocation10 + $0x290] sm:$0xff] }
 0x3e4   :  { %2441 = vmatprep.mubr.f32.mxu1 %v3868_v49  ;;  %2730 = vmatpush1.bf16.msra.mxu1 %v2729_v55  ;;  %v2751_v55 = vpack.c.bf16 %v1319_v40, %v1317_v17  ;;  %v1321_v49 = vld [vmem:[#allocation10 + $0x2a8] sm:$0xff] }
 0x3e5   :  { %2732 = vmatprep.subr.bf16.mxu1 %v2731_v42  ;;  %v1316_v42 = vld [vmem:[#allocation10 + $0x280] sm:$0xff] }
 0x3e6   :  { %v2753_v3 = vpack.c.bf16 %v1318_v11, %v1316_v42  ;;  %v3125_v11 = vmov 0.0|0.0  }
 0x3e7   :  { %2442 = vmatmul.mubr.f32.gmra.mrb[46].mxu1 %v3869_v33  ;;  %v1323_v33 = vld [vmem:[#allocation10 + $0x2b8] sm:$0xff]  ;;  %2767 = vmatprep.subr.bf16.mxu0 %v3125_v11 }
 0x3e8   :  { %2734 = vmatpush1.bf16.msra.mxu1 %v2733_v51  ;;  %v2755_v61 = vpack.c.bf16 %v1323_v33, %v1321_v49  ;;  %v1332_v49 = vld [vmem:[%s3843_s8] sm:$0x3]  ;;  %s3128_s8 = smov [#allocation11]  }
 0x3e9   :  { %2736 = vmatprep.subr.bf16.mxu1 %v2735_v54  ;;  %v1322_v54 = vld [vmem:[#allocation10 + $0x2b0] sm:$0xff]  ;;  %v3761_v33 = vrot.slane %v1332_v49, %v842_v59  ;;  %s2053_s11 = sshll.u32 %s3128_s8, 4  ;;  %s2054_s11 = int_to_ptr.vmem [resolvable:$true] %s2053_s11 }
 0x3ea   :  { %v2757_v52 = vpack.c.bf16 %v1322_v54, %v1320_v56  ;;  %s3084_s13 = scalar_lea.vmem %s2054_s11, 128  ;;  %p3089_p13 = scmp.lt.s32.totalorder %s2054_s11, %s2054_s11 }
 0x3eb   :  { %p3085_p12 = scmp.ne.s32.totalorder %s2054_s11, %s3084_s13  ;;  %p3090_p0 = scmp.lt.s32.totalorder %s3084_s13, %s3084_s13 }
 0x3ed   :  { %p3091_p1 = por %p3090_p0, %p3089_p13 }
 0x3ef   :  { %p3092_p2 = pnand %p3091_p1, %p3085_p12 }
 0x47e   :  { %v2398_v46 = vpop.f32.mrb[16].mxu1 }
 0x47f   :  { %v1399_v37 = vpop.f32.mrb[17].mxu1 }
 0x480   :  { %1633 = vmatprep.mubr.f32.mxu1 %v1399_v37  ;;  %v1329_v37 = vld [vmem:[#allocation10 + $0x2e8] sm:$0xff] }
 0x481   :  { %1634 = vmatmul.mubr.f32.vlgmr.msra.gmra.mrb[48].mxu1 %v3599_v43 }
 0x482   :  { %v2401_v4 = vpop.f32.mrb[18].mxu1  ;;  %1639 = vmatprep.mubr.f32.mxu1 %v2398_v46  ;;  %2738 = vmatpush1.bf16.msra.mxu1 %v2737_v58  ;;  %v2759_v46 = vpack.c.bf16 %v1327_v19, %v1325_v9  ;;  %v1324_v58 = vld [vmem:[#allocation10 + $0x2c0] sm:$0xff] }
 0x483   :  { %v1409_v45 = vpop.f32.mrb[19].mxu1  ;;  %2740 = vmatprep.subr.bf16.mxu1 %v2739_v5  ;;  %v1331_v5 = vld [vmem:[#allocation10 + $0x2f8] sm:$0xff]  ;;  %v2761_v39 = vpack.c.bf16 %v1326_v63, %v1324_v58 }
 0x484   :  { %v2763_v50 = vpack.c.bf16 %v1331_v5, %v1329_v37 }
 0x485   :  { %1640 = vmatmul.mubr.f32.gmra.mrb[50].mxu1 %v3602_v30 }
 0x486   :  { %v2404_v0 = vpop.f32.mrb[20].mxu1  ;;  %1645 = vmatprep.mubr.f32.mxu1 %v1409_v45  ;;  %2742 = vmatpush1.bf16.msra.mxu1 %v2741_v12  ;;  %v1330_v12 = vld [vmem:[#allocation10 + $0x2f0] sm:$0xff] }
 0x487   :  { %v1419_v10 = vpop.f32.mrb[21].mxu1  ;;  %2744 = vmatprep.subr.bf16.mxu1 %v2743_v38 }
 0x489   :  { %1646 = vmatmul.mubr.f32.gmra.mrb[52].mxu1 %v3611_v18 }
 0x48a   :  { %v2407_v6 = vpop.f32.mrb[22].mxu1  ;;  %1651 = vmatprep.mubr.f32.mxu1 %v2401_v4  ;;  %2746 = vmatpush1.bf16.msra.mxu1 %v2745_v8  ;;  %v1328_v4 = vld [vmem:[#allocation10 + $0x2e0] sm:$0xff] }
 0x48b   :  { %v1429_v25 = vpop.f32.mrb[23].mxu1  ;;  %2748 = vmatprep.subr.bf16.mxu1 %v2747_v21  ;;  %v2765_v38 = vpack.c.bf16 %v1330_v12, %v1328_v4 }
 0x48d   :  { %1652 = vmatmul.mubr.f32.gmra.mrb[54].mxu1 %v3614_v1 }
 0x48e   :  { %v2410_v23 = vpop.f32.mrb[24].mxu1  ;;  %1657 = vmatprep.mubr.f32.mxu1 %v1419_v10  ;;  %2750 = vmatpush1.bf16.msra.mxu1 %v2749_v36 }
 0x48f   :  { %v1439_v51 = vpop.f32.mrb[25].mxu1  ;;  %2752 = vmatprep.subr.bf16.mxu1 %v2751_v55 }
 0x491   :  { %1658 = vmatmul.mubr.f32.gmra.mrb[56].mxu1 %v3623_v15 }
 0x492   :  { %v2413_v57 = vpop.f32.mrb[26].mxu1  ;;  %1663 = vmatprep.mubr.f32.mxu1 %v2404_v0  ;;  %2754 = vmatpush1.bf16.msra.mxu1 %v2753_v3 }
 0x493   :  { %v1449_v27 = vpop.f32.mrb[27].mxu1  ;;  %2756 = vmatprep.subr.bf16.mxu1 %v2755_v61 }
 0x495   :  { %1664 = vmatmul.mubr.f32.gmra.mrb[58].mxu1 %v3626_v34 }
 0x496   :  { %v2416_v53 = vpop.f32.mrb[28].mxu1  ;;  %1669 = vmatprep.mubr.f32.mxu1 %v1429_v25  ;;  %2758 = vmatpush1.bf16.msra.mxu1 %v2757_v52 }
 0x497   :  { %v1459_v13 = vpop.f32.mrb[29].mxu1  ;;  %2760 = vmatprep.subr.bf16.mxu1 %v2759_v46 }
 0x499   :  { %1670 = vmatmul.mubr.f32.gmra.mrb[60].mxu1 %v3635_v24 }
 0x49a   :  { %v2419_v45 = vpop.f32.mrb[30].mxu1  ;;  %1675 = vmatprep.mubr.f32.mxu1 %v2407_v6  ;;  %2762 = vmatpush1.bf16.msra.mxu1 %v2761_v39 }
 0x49b   :  { %v1469_v14 = vpop.f32.mrb[31].mxu1  ;;  %2764 = vmatprep.subr.bf16.mxu1 %v2763_v50 }
 0x49d   :  { %1676 = vmatmul.mubr.f32.gmra.mrb[62].mxu1 %v3638_v20 }
 0x49e   :  { %v2422_v60 = vpop.f32.mrb[32].mxu1  ;;  %1681 = vmatprep.mubr.f32.mxu1 %v1439_v51  ;;  %2766 = vmatpush1.bf16.msra.mxu1 %v2765_v38 }
 0x49f   :  { %v1479_v26 = vpop.f32.mrb[33].mxu1 }
 0x4a1   :  { %1682 = vmatmul.mubr.f32.gmra.mrb[64].mxu1 %v3647_v32 }
 0x4a2   :  { %v2425_v31 = vpop.f32.mrb[34].mxu1  ;;  %1687 = vmatprep.mubr.f32.mxu1 %v2410_v23  ;;  %v3765_v23 = vrot.slane %v1332_v49, %v846_v47 }
 0x4a3   :  { %v1489_v0 = vpop.f32.mrb[35].mxu1 }
 0x4a5   :  { %1688 = vmatmul.mubr.f32.gmra.mrb[66].mxu1 %v3650_v28 }
 0x4a6   :  { %v2428_v8 = vpop.f32.mrb[36].mxu1  ;;  %1693 = vmatprep.mubr.f32.mxu1 %v1449_v27 }
 0x4a7   :  { %v1499_v10 = vpop.f32.mrb[37].mxu1 }
 0x4a9   :  { %1694 = vmatmul.mubr.f32.gmra.mrb[68].mxu1 %v3659_v41 }
 0x4aa   :  { %v2431_v21 = vpop.f32.mrb[38].mxu1  ;;  %1699 = vmatprep.mubr.f32.mxu1 %v2413_v57 }
 0x4ab   :  { %v1509_v62 = vpop.f32.mrb[39].mxu1 }
 0x4ad   :  { %1700 = vmatmul.mubr.f32.gmra.mrb[70].mxu1 %v3662_v35 }
 0x4ae   :  { %v2434_v29 = vpop.f32.mrb[40].mxu1  ;;  %1705 = vmatprep.mubr.f32.mxu1 %v1459_v13 }
 0x4af   :  { %v1519_v17 = vpop.f32.mrb[41].mxu1 }
 0x4b1   :  { %1706 = vmatmul.mubr.f32.gmra.mrb[72].mxu1 %v3671_v48 }
 0x4b2   :  { %v2437_v40 = vpop.f32.mrb[42].mxu1  ;;  %1711 = vmatprep.mubr.f32.mxu1 %v2416_v53 }
 0x4b3   :  { %v1529_v6 = vpop.f32.mrb[43].mxu1 }
 0x4b5   :  { %1712 = vmatmul.mubr.f32.gmra.mrb[74].mxu1 %v3674_v44 }
 0x4b6   :  { %v2440_v36 = vpop.f32.mrb[44].mxu1  ;;  %1717 = vmatprep.mubr.f32.mxu1 %v1469_v14 }
 0x4b7   :  { %v1539_v25 = vpop.f32.mrb[45].mxu1 }
 0x4b9   :  { %1718 = vmatmul.mubr.f32.gmra.mrb[76].mxu1 %v3681_v22 }
 0x4ba   :  { %v2443_v55 = vpop.f32.mrb[46].mxu1  ;;  %1723 = vmatprep.mubr.f32.mxu1 %v2419_v45 }
 0x4bb   :  { %v1549_v42 = vpop.f32.mrb[47].mxu1 }
 0x4bd   :  { %1724 = vmatmul.mubr.f32.gmra.mrb[78].mxu1 %v3684_v2 }
 0x4be   :  { %1794 = vmatprep.mubr.f32.mxu1 %v3862_v7 }
 0x4c1   :  { %1795 = vmatmul.mubr.f32.vlgmr.msra.gmra.mrb[48].mxu1 %v1479_v26 }
 0x4c2   :  { %1800 = vmatprep.mubr.f32.mxu1 %v3862_v7 }
 0x4c5   :  { %1801 = vmatmul.mubr.f32.gmra.mrb[50].mxu1 %v2422_v60 }
 0x4c6   :  { %1806 = vmatprep.mubr.f32.mxu1 %v3862_v7 }
 0x4c9   :  { %1807 = vmatmul.mubr.f32.gmra.mrb[52].mxu1 %v1489_v0 }
 0x4ca   :  { %1812 = vmatprep.mubr.f32.mxu1 %v3862_v7 }
 0x4cd   :  { %1813 = vmatmul.mubr.f32.gmra.mrb[54].mxu1 %v2425_v31 }
 0x4ce   :  { %1818 = vmatprep.mubr.f32.mxu1 %v3862_v7 }
 0x4d1   :  { %1819 = vmatmul.mubr.f32.gmra.mrb[56].mxu1 %v1499_v10 }
 0x4d2   :  { %1824 = vmatprep.mubr.f32.mxu1 %v3862_v7 }
 0x4d5   :  { %1825 = vmatmul.mubr.f32.gmra.mrb[58].mxu1 %v2428_v8 }
 0x4d6   :  { %1830 = vmatprep.mubr.f32.mxu1 %v3862_v7 }
 0x4d9   :  { %1831 = vmatmul.mubr.f32.gmra.mrb[60].mxu1 %v1509_v62 }
 0x4da   :  { %1836 = vmatprep.mubr.f32.mxu1 %v3862_v7 }
 0x4dd   :  { %1837 = vmatmul.mubr.f32.gmra.mrb[62].mxu1 %v2431_v21 }
 0x4de   :  { %1842 = vmatprep.mubr.f32.mxu1 %v3862_v7 }
 0x4e1   :  { %1843 = vmatmul.mubr.f32.gmra.mrb[64].mxu1 %v1519_v17 }
 0x4e2   :  { %1848 = vmatprep.mubr.f32.mxu1 %v3862_v7 }
 0x4e5   :  { %1849 = vmatmul.mubr.f32.gmra.mrb[66].mxu1 %v2434_v29 }
 0x4e6   :  { %1854 = vmatprep.mubr.f32.mxu1 %v3862_v7 }
 0x4e9   :  { %1855 = vmatmul.mubr.f32.gmra.mrb[68].mxu1 %v1529_v6 }
 0x4ea   :  { %1860 = vmatprep.mubr.f32.mxu1 %v3862_v7 }
 0x4ed   :  { %1861 = vmatmul.mubr.f32.gmra.mrb[70].mxu1 %v2437_v40 }
 0x4ee   :  { %1866 = vmatprep.mubr.f32.mxu1 %v3862_v7 }
 0x4f1   :  { %1867 = vmatmul.mubr.f32.gmra.mrb[72].mxu1 %v1539_v25 }
 0x4f2   :  { %1872 = vmatprep.mubr.f32.mxu1 %v3862_v7 }
 0x4f5   :  { %1873 = vmatmul.mubr.f32.gmra.mrb[74].mxu1 %v2440_v36 }
 0x4f6   :  { %1878 = vmatprep.mubr.f32.mxu1 %v3862_v7 }
 0x4f9   :  { %1879 = vmatmul.mubr.f32.gmra.mrb[76].mxu1 %v1549_v42 }
 0x4fa   :  { %1884 = vmatprep.mubr.f32.mxu1 %v3862_v7 }
 0x4fd   :  { %1885 = vmatmul.mubr.f32.gmra.mrb[78].mxu1 %v2443_v55 }
 0x594   :  { %v1796_v3 = vpop.f32.mrb[48].mxu1 }
 0x595   :  { %v2823_v51 = vadd.f32 %v1796_v3, %v3761_v33  ;;  %v1798_v61 = vpop.f32.mrb[49].mxu1 }
 0x596   :  { %v2824_v56 = vadd.f32 %v1798_v61, %v3765_v23 }
 0x597   :  { %v1891_v54 = vmax.f32 %v2823_v51, 0.0 }
 0x598   :  { %v1892_v7 = vmax.f32 %v2824_v56, 0.0  ;;  %v1802_v9 = vpop.f32.mrb[50].mxu1 }
 0x599   :  { %v2825_v19 = vadd.f32 %v1802_v9, %v3761_v33  ;;  %v1804_v57 = vpop.f32.mrb[51].mxu1 }
 0x59a   :  { %v1923_v52 = vadd.f32 %v1892_v7, %v1891_v54  ;;  %v2826_v59 = vadd.f32 %v1804_v57, %v3765_v23 }
 0x59b   :  { %v1893_v27 = vmax.f32 %v2825_v19, 0.0 }
 0x59c   :  { %v1894_v46 = vmax.f32 %v2826_v59, 0.0  ;;  %v1808_v16 = vpop.f32.mrb[52].mxu1  ;;  %v1939_v53 = vadd.f32 %v1923_v52, %v3599_v43 }
 0x59d   :  { %v2827_v47 = vadd.f32 %v1808_v16, %v3761_v33  ;;  %v1810_v58 = vpop.f32.mrb[53].mxu1 }
 0x59e   :  { %v1924_v63 = vadd.f32 %v1894_v46, %v1893_v27  ;;  %v2828_v37 = vadd.f32 %v1810_v58, %v3765_v23 }
 0x59f   :  { %v1895_v5 = vmax.f32 %v2827_v47, 0.0 }
 0x5a0   :  { %v1940_v39 = vadd.f32 %v1924_v63, %v3602_v30  ;;  %v1896_v13 = vmax.f32 %v2828_v37, 0.0  ;;  %v1814_v50 = vpop.f32.mrb[54].mxu1 }
 0x5a1   :  { %v2829_v4 = vadd.f32 %v1814_v50, %v3761_v33  ;;  %v1816_v12 = vpop.f32.mrb[55].mxu1 }
 0x5a2   :  { %v2768_v45 = vpack.c.bf16 %v1940_v39, %v1939_v53  ;;  %v1925_v38 = vadd.f32 %v1896_v13, %v1895_v5  ;;  %v2830_v14 = vadd.f32 %v1816_v12, %v3765_v23 }
 0x5a3   :  { %v1897_v60 = vmax.f32 %v2829_v4, 0.0 }
 0x5a4   :  { %v1898_v26 = vmax.f32 %v2830_v14, 0.0  ;;  %v1820_v31 = vpop.f32.mrb[56].mxu1  ;;  %2769 = vmatpush3.bf16.msra.mxu0 %v2768_v45  ;;  %v1941_v21 = vadd.f32 %v1925_v38, %v3611_v18 }
 0x5a5   :  { %v2831_v0 = vadd.f32 %v1820_v31, %v3761_v33  ;;  %v1822_v8 = vpop.f32.mrb[57].mxu1  ;;  %2770 = vmatprep.subr.bf16.mxu0 %v3125_v11 }
 0x5a6   :  { %v1926_v43 = vadd.f32 %v1898_v26, %v1897_v60  ;;  %v2832_v30 = vadd.f32 %v1822_v8, %v3765_v23 }
 0x5a7   :  { %v1899_v10 = vmax.f32 %v2831_v0, 0.0 }
 0x5a8   :  { %v1942_v62 = vadd.f32 %v1926_v43, %v3614_v1  ;;  %v1900_v29 = vmax.f32 %v2832_v30, 0.0  ;;  %v1826_v17 = vpop.f32.mrb[58].mxu1 }
 0x5a9   :  { %v2833_v40 = vadd.f32 %v1826_v17, %v3761_v33  ;;  %v1828_v6 = vpop.f32.mrb[59].mxu1 }
 0x5aa   :  { %v2771_v36 = vpack.c.bf16 %v1942_v62, %v1941_v21  ;;  %v1927_v25 = vadd.f32 %v1900_v29, %v1899_v10  ;;  %v2834_v55 = vadd.f32 %v1828_v6, %v3765_v23 }
 0x5ab   :  { %v1901_v42 = vmax.f32 %v2833_v40, 0.0 }
 0x5ac   :  { %v1902_v49 = vmax.f32 %v2834_v55, 0.0  ;;  %v1832_v3 = vpop.f32.mrb[60].mxu1  ;;  %2772 = vmatpush3.bf16.msra.mxu0 %v2771_v36  ;;  %v1943_v54 = vadd.f32 %v1927_v25, %v3623_v15 }
 0x5ad   :  { %v2835_v51 = vadd.f32 %v1832_v3, %v3761_v33  ;;  %v1834_v61 = vpop.f32.mrb[61].mxu1  ;;  %2773 = vmatprep.subr.bf16.mxu0 %v3125_v11 }
 0x5ae   :  { %v1928_v18 = vadd.f32 %v1902_v49, %v1901_v42  ;;  %v2836_v1 = vadd.f32 %v1834_v61, %v3765_v23 }
 0x5af   :  { %v1903_v56 = vmax.f32 %v2835_v51, 0.0 }
 0x5b0   :  { %v1944_v7 = vadd.f32 %v1928_v18, %v3626_v34  ;;  %v1904_v9 = vmax.f32 %v2836_v1, 0.0  ;;  %v1838_v19 = vpop.f32.mrb[62].mxu1 }
 0x5b1   :  { %v2837_v57 = vadd.f32 %v1838_v19, %v3761_v33  ;;  %v1840_v52 = vpop.f32.mrb[63].mxu1 }
 0x5b2   :  { %v2774_v59 = vpack.c.bf16 %v1944_v7, %v1943_v54  ;;  %v1929_v27 = vadd.f32 %v1904_v9, %v1903_v56  ;;  %v2838_v46 = vadd.f32 %v1840_v52, %v3765_v23 }
 0x5b3   :  { %v1905_v16 = vmax.f32 %v2837_v57, 0.0 }
 0x5b4   :  { %v1906_v47 = vmax.f32 %v2838_v46, 0.0  ;;  %v1844_v58 = vpop.f32.mrb[64].mxu1  ;;  %2775 = vmatpush3.bf16.msra.mxu0 %v2774_v59  ;;  %v1945_v53 = vadd.f32 %v1929_v27, %v3635_v24 }
 0x5b5   :  { %v2839_v63 = vadd.f32 %v1844_v58, %v3761_v33  ;;  %v1846_v37 = vpop.f32.mrb[65].mxu1  ;;  %2776 = vmatprep.subr.bf16.mxu0 %v3125_v11 }
 0x5b6   :  { %v1930_v15 = vadd.f32 %v1906_v47, %v1905_v16  ;;  %v2840_v34 = vadd.f32 %v1846_v37, %v3765_v23 }
 0x5b7   :  { %v1907_v5 = vmax.f32 %v2839_v63, 0.0 }
 0x5b8   :  { %v1946_v39 = vadd.f32 %v1930_v15, %v3638_v20  ;;  %v1908_v13 = vmax.f32 %v2840_v34, 0.0  ;;  %v1850_v50 = vpop.f32.mrb[66].mxu1 }
 0x5b9   :  { %v2841_v4 = vadd.f32 %v1850_v50, %v3761_v33  ;;  %v1852_v12 = vpop.f32.mrb[67].mxu1 }
 0x5ba   :  { %v2777_v45 = vpack.c.bf16 %v1946_v39, %v1945_v53  ;;  %v1931_v38 = vadd.f32 %v1908_v13, %v1907_v5  ;;  %v2842_v14 = vadd.f32 %v1852_v12, %v3765_v23 }
 0x5bb   :  { %v1909_v60 = vmax.f32 %v2841_v4, 0.0 }
 0x5bc   :  { %v1910_v26 = vmax.f32 %v2842_v14, 0.0  ;;  %v1856_v31 = vpop.f32.mrb[68].mxu1  ;;  %2778 = vmatpush3.bf16.msra.mxu0 %v2777_v45  ;;  %v1947_v30 = vadd.f32 %v1931_v38, %v3647_v32  ;;  %v1960_v14 = vpop.permute.xlu1 %1959 }
 0x5bd   :  { %v2843_v0 = vadd.f32 %v1856_v31, %v3761_v33  ;;  %v1858_v8 = vpop.f32.mrb[69].mxu1  ;;  %2779 = vmatprep.subr.bf16.mxu0 %v3125_v11 }
 0x5be   :  { %v1932_v24 = vadd.f32 %v1910_v26, %v1909_v60  ;;  %v2844_v20 = vadd.f32 %v1858_v8, %v3765_v23 }
 0x5bf   :  { %v1911_v43 = vmax.f32 %v2843_v0, 0.0 }
 0x5c0   :  { %v1948_v10 = vadd.f32 %v1932_v24, %v3650_v28  ;;  %v1912_v21 = vmax.f32 %v2844_v20, 0.0  ;;  %v1862_v62 = vpop.f32.mrb[70].mxu1 }
 0x5c1   :  { %v2845_v29 = vadd.f32 %v1862_v62, %v3761_v33  ;;  %v1864_v17 = vpop.f32.mrb[71].mxu1 }
 0x5c2   :  { %v2780_v40 = vpack.c.bf16 %v1948_v10, %v1947_v30  ;;  %v1933_v6 = vadd.f32 %v1912_v21, %v1911_v43  ;;  %v2846_v36 = vadd.f32 %v1864_v17, %v3765_v23 }
 0x5c3   :  { %v1913_v25 = vmax.f32 %v2845_v29, 0.0 }
 0x5c4   :  { %v1914_v55 = vmax.f32 %v2846_v36, 0.0  ;;  %v1868_v42 = vpop.f32.mrb[72].mxu1  ;;  %2781 = vmatpush3.bf16.msra.mxu0 %v2780_v40  ;;  %v1949_v61 = vadd.f32 %v1933_v6, %v3659_v41 }
 0x5c5   :  { %v2847_v49 = vadd.f32 %v1868_v42, %v3761_v33  ;;  %v1870_v3 = vpop.f32.mrb[73].mxu1  ;;  %2782 = vmatprep.subr.bf16.mxu0 %v3125_v11 }
 0x5c6   :  { %v1934_v32 = vadd.f32 %v1914_v55, %v1913_v25  ;;  %v2848_v28 = vadd.f32 %v1870_v3, %v3765_v23 }
 0x5c7   :  { %v1915_v51 = vmax.f32 %v2847_v49, 0.0 }
 0x5c8   :  { %v1950_v18 = vadd.f32 %v1934_v32, %v3662_v35  ;;  %v1916_v1 = vmax.f32 %v2848_v28, 0.0  ;;  %v1874_v56 = vpop.f32.mrb[74].mxu1 }
 0x5c9   :  { %v2849_v54 = vadd.f32 %v1874_v56, %v3761_v33  ;;  %v1876_v7 = vpop.f32.mrb[75].mxu1 }
 0x5ca   :  { %v2783_v9 = vpack.c.bf16 %v1950_v18, %v1949_v61  ;;  %v1935_v19 = vadd.f32 %v1916_v1, %v1915_v51  ;;  %v2850_v57 = vadd.f32 %v1876_v7, %v3765_v23 }
 0x5cb   :  { %v1917_v52 = vmax.f32 %v2849_v54, 0.0 }
 0x5cc   :  { %v1918_v59 = vmax.f32 %v2850_v57, 0.0  ;;  %v1880_v27 = vpop.f32.mrb[76].mxu1  ;;  %2784 = vmatpush3.bf16.msra.mxu0 %v2783_v9  ;;  %v1951_v58 = vadd.f32 %v1935_v19, %v3671_v48 }
 0x5cd   :  { %v2851_v46 = vadd.f32 %v1880_v27, %v3761_v33  ;;  %v1882_v16 = vpop.f32.mrb[77].mxu1  ;;  %2785 = vmatprep.subr.bf16.mxu0 %v3125_v11 }
 0x5ce   :  { %v1936_v41 = vadd.f32 %v1918_v59, %v1917_v52  ;;  %v2852_v35 = vadd.f32 %v1882_v16, %v3765_v23 }
 0x5cf   :  { %v1919_v47 = vmax.f32 %v2851_v46, 0.0 }
 0x5d0   :  { %v1952_v63 = vadd.f32 %v1936_v41, %v3674_v44  ;;  %v1920_v37 = vmax.f32 %v2852_v35, 0.0  ;;  %v1886_v15 = vpop.f32.mrb[78].mxu1  ;;  %v3870_v44 = vlaneseq }
 0x5d1   :  { %v2853_v34 = vadd.f32 %v1886_v15, %v3761_v33  ;;  %v1888_v5 = vpop.f32.mrb[79].mxu1  ;;  %v3127_v33 = vmov 1.0  }
 0x5d2   :  { %v2786_v53 = vpack.c.bf16 %v1952_v63, %v1951_v58  ;;  %v1937_v39 = vadd.f32 %v1920_v37, %v1919_v47  ;;  %v2854_v13 = vadd.f32 %v1888_v5, %v3765_v23  ;;  %v1957_v38 = vand.u32 127, %v3870_v44 }
 0x5d3   :  { %v1921_v50 = vmax.f32 %v2853_v34, 0.0 }
 0x5d4   :  { %v1922_v4 = vmax.f32 %v2854_v13, 0.0  ;;  %2787 = vmatpush3.bf16.msra.mxu0 %v2786_v53  ;;  %v1953_v45 = vadd.f32 %v1937_v39, %v3681_v22  ;;  %vm1961_vm1 = vcmp.eq.s32.totalorder %v1957_v38, %v1960_v14 }
 0x5d5   :  { %2788 = vmatprep.subr.bf16.mxu0 %v3125_v11 }
 0x5d6   :  { %v1938_v12 = vadd.f32 %v1922_v4, %v1921_v50 }
 0x5d8   :  { %v1954_v48 = vadd.f32 %v1938_v12, %v3684_v2 }
 0x5da   :  { %v2789_v60 = vpack.c.bf16 %v1954_v48, %v1953_v45 }
 0x5dc   :  { %2790 = vmatpush3.bf16.msra.mxu0 %v2789_v60 }
 0x5df   :  { %2477 = vmatmul.mubr.msk.f32.vlgmr.msra.gmra.mrb[64].mxu0 %vm1961_vm1, %v3127_v33 }
 0x6b2   :  { %v2030_v26 = vpop.f32.mrb[64].mxu0 }
 0x6b3   :  { %v2034_v23 = vmul.f32 %v2030_v26, %v2030_v26  ;;  %v2478_v31 = vpop.f32.mrb[65].mxu0 }
 0x6b5   :  { %2035 = vadd.xlane.f32.xlu1 %v2034_v23 }
 0x742   :  { %v2036_v0 = vpop.xlane.xlu1 %2035 }
 0x743   :  { %2970 = vrsqrt.f32 %v2036_v0  ;;  %vm2039_vm2 = vcmp.eq.f32.partialorder %v2036_v0, inf  ;;  %v2042_v22 = vand.u32 2147483648, %v2036_v0  ;;  %vm2041_vm3 = vcmp.eq.f32.partialorder %v2036_v0, 0.0 }
 0x74d   :  { %v2971_v11 = vpop.eup %2970 }
 0x74e   :  { %v2038_v8 = vmul.f32 %v2971_v11, %v2036_v0 }
 0x750   :  { %v2040_v24 = vsel %vm2039_vm2, %v2036_v0, %v2038_v8 }
 0x751   :  { %v2043_v2 = vsel %vm2041_vm3, %v2042_v22, %v2040_v24 }
 0x752   :  { %2972 = vrcp.f32 %v2043_v2 }
 0x75c   :  { %v2973_v20 = vpop.eup %2972 }
 0x75d   :  { %v2045_v43 = vmul.f32 %v2973_v20, %v2030_v26 }
 0x75f   :  { %2046 = vst [vmem:[#allocation11] sm:$0xff] %v2045_v43 }
 0x760   :  { %3095 = shalt.err (!%p3092_p2)
}
 0x761   :  { %s3096_s16 = scalar_lea.hbm %s3844_s9, 128 }
 0x762   :  { %p3097_p3 = scmp.ne.s32.totalorder %s3844_s9, %s3096_s16  ;;  %p3100_p4 = scmp.lt.u32.totalorder %s3096_s16, %s3844_s9 }
 0x764   :  { %p3102_p5 = pnand %p3100_p4, %p3097_p3 }
 0x766   :  { %3105 = shalt.err (!%p3102_p5)
}
 0x767   :  { %2056 = dma.vmem_to_hbm [thread:$0]  %s2054_s11, 128, %s3844_s9, [#allocation4]  }
 0x768   :  { %3112 = dma.done.wait [#allocation4], 128  }
 0x769   :  { %3113 = vsyncadd [#allocation4], 4294967168 }
 0x76a   :  { %2060 = vsyncpa [#allocation3], 1 }
 0x76b   :  { %2061 = vsyncpa [#allocation6], 1 }
 0x76c   :  { %2062 = vsyncpa [#allocation9], 1 }
 0x76d   :  { %2063 = vsyncpa [#allocation4], 1 }

</bundles_post_ra>
